<compile_context>
chip_gen: v6e
topology: v6e:2x2x1
jax: 0.10.0
libtpu: 0.0.40
codegen_flags: <defaults>
</compile_context>

<pallas_src>
import math

import jax
import jax.numpy as jnp
from jax.experimental import pallas as pl
from jax.experimental.pallas import tpu as pltpu

# ----------------------------- model config ---------------------------------
HIDDEN = 32              # BioBERT: 768
NUM_HEADS = 4            # BioBERT: 12
HEAD_DIM = HIDDEN // NUM_HEADS
INTERMEDIATE = 4 * HIDDEN
NUM_LAYERS = 2           # BioBERT: 12
VOCAB = 128
MAX_POS = 64
NUM_ACTIONS = 4
LN_EPS = 1e-12
BATCH = 2
SEQ = 8
HEAD_OUT = NUM_ACTIONS + 1   # policy logits + value fused into one matmul


# ----------------------------- fused Pallas kernel ---------------------------
def _fused_model_kernel(
    emb_ref, mask_ref,
    emb_ln_g_ref, emb_ln_b_ref,
    wqkv_ref, bqkv_ref, wo_ref, bo_ref, ln1_g_ref, ln1_b_ref,
    wi_ref, bi_ref, wo2_ref, bo2_ref, ln2_g_ref, ln2_b_ref,
    pool_w_ref, pool_b_ref, head_w_ref, head_b_ref,
    out_ref,
):
    S, H = SEQ, HIDDEN
    scale = 1.0 / math.sqrt(HEAD_DIM)

    def layer_norm(h, g, b):
        mu = jnp.mean(h, axis=-1, keepdims=True)
        var = jnp.mean(jnp.square(h - mu), axis=-1, keepdims=True)
        return (h - mu) * jax.lax.rsqrt(var + LN_EPS) * g + b

    def gelu(y):
        # TODO(synk): HF BERT uses exact erf-GELU; tanh approximation used here.
        return 0.5 * y * (1.0 + jnp.tanh(
            0.7978845608028654 * (y + 0.044715 * y * y * y)))

    # ---- embeddings (already summed in the wrapper) + LayerNorm (no residual)
    x = emb_ref[0]                                        # (S, H)
    x = layer_norm(x, emb_ln_g_ref[...], emb_ln_b_ref[...])

    # additive mask, HF-style: (1 - mask) * large negative, broadcast over queries
    neg_bias = (1.0 - mask_ref[0]) * jnp.float32(-1e9)    # (1, S)

    # ---- transformer layers (Python loop -> unrolled, weights VMEM-resident)
    for l in range(NUM_LAYERS):
        # fused QKV projection: (S, H) @ (H, 3H)
        qkv = jnp.dot(x, wqkv_ref[l],
                      preferred_element_type=jnp.float32) + bqkv_ref[l]
        wo_l = wo_ref[l]                                  # (H, H)

        # attention over all heads, accumulated straight into the out-proj
        attn_acc = jnp.zeros((S, H), jnp.float32)
        for h in range(NUM_HEADS):
            lo = h * HEAD_DIM
            hi = lo + HEAD_DIM
            qh = qkv[:, lo:hi]                            # (S, Dh)
            kh = qkv[:, H + lo:H + hi]                    # (S, Dh)
            vh = qkv[:, 2 * H + lo:2 * H + hi]            # (S, Dh)
            s = jax.lax.dot_general(
                qh, kh, (((1,), (1,)), ((), ())),
                preferred_element_type=jnp.float32) * scale  # (S, S)
            s = s + neg_bias
            s = s - jnp.max(s, axis=-1, keepdims=True)
            p = jnp.exp(s)
            p = p / jnp.sum(p, axis=-1, keepdims=True)
            ctx_h = jnp.dot(p, vh, preferred_element_type=jnp.float32)  # (S, Dh)
            # ctx @ Wo == sum_h ctx_h @ Wo[rows of head h]
            attn_acc = attn_acc + jnp.dot(
                ctx_h, wo_l[lo:hi, :], preferred_element_type=jnp.float32)

        attn_out = attn_acc + bo_ref[l]
        x = layer_norm(attn_out + x, ln1_g_ref[l], ln1_b_ref[l])   # add & norm

        inter = gelu(jnp.dot(x, wi_ref[l],
                             preferred_element_type=jnp.float32) + bi_ref[l])
        ffn_out = jnp.dot(inter, wo2_ref[l],
                          preferred_element_type=jnp.float32) + bo2_ref[l]
        x = layer_norm(ffn_out + x, ln2_g_ref[l], ln2_b_ref[l])    # add & norm

    # ---- pooler (tanh(W * h[:,0] + b)) + fused policy/value head
    cls = x[0:1, :]                                       # (1, H) [CLS]
    pooled = jnp.tanh(
        jnp.dot(cls, pool_w_ref[...],
                preferred_element_type=jnp.float32) + pool_b_ref[...])
    head = jnp.dot(pooled, head_w_ref[...],
                   preferred_element_type=jnp.float32) + head_b_ref[...]
    out_ref[0] = head.astype(out_ref.dtype)               # (1, HEAD_OUT)


def bert_ppo_fused(emb, mask, p):
    """emb: (B, S, H) f32; mask: (B, 1, S) f32 (1.0 keep / 0.0 pad)."""
    B = emb.shape[0]
    L, H, I, A1 = NUM_LAYERS, HIDDEN, INTERMEDIATE, HEAD_OUT

    in_specs = [
        pl.BlockSpec((1, SEQ, H), lambda b: (b, 0, 0)),    # emb (per-batch)
        pl.BlockSpec((1, 1, SEQ), lambda b: (b, 0, 0)),    # mask (per-batch)
        pl.BlockSpec((1, H), lambda b: (0, 0)),            # emb_ln_g
        pl.BlockSpec((1, H), lambda b: (0, 0)),            # emb_ln_b
        pl.BlockSpec((L, H, 3 * H), lambda b: (0, 0, 0)),  # wqkv
        pl.BlockSpec((L, 1, 3 * H), lambda b: (0, 0, 0)),  # bqkv
        pl.BlockSpec((L, H, H), lambda b: (0, 0, 0)),      # wo
        pl.BlockSpec((L, 1, H), lambda b: (0, 0, 0)),      # bo
        pl.BlockSpec((L, 1, H), lambda b: (0, 0, 0)),      # ln1_g
        pl.BlockSpec((L, 1, H), lambda b: (0, 0, 0)),      # ln1_b
        pl.BlockSpec((L, H, I), lambda b: (0, 0, 0)),      # wi
        pl.BlockSpec((L, 1, I), lambda b: (0, 0, 0)),      # bi
        pl.BlockSpec((L, I, H), lambda b: (0, 0, 0)),      # wo2
        pl.BlockSpec((L, 1, H), lambda b: (0, 0, 0)),      # bo2
        pl.BlockSpec((L, 1, H), lambda b: (0, 0, 0)),      # ln2_g
        pl.BlockSpec((L, 1, H), lambda b: (0, 0, 0)),      # ln2_b
        pl.BlockSpec((H, H), lambda b: (0, 0)),            # pool_w
        pl.BlockSpec((1, H), lambda b: (0, 0)),            # pool_b
        pl.BlockSpec((H, A1), lambda b: (0, 0)),           # head_w (policy||value)
        pl.BlockSpec((1, A1), lambda b: (0, 0)),           # head_b
    ]
    out_specs = pl.BlockSpec((1, 1, A1), lambda b: (b, 0, 0))

    return pl.pallas_call(
        _fused_model_kernel,
        out_shape=jax.ShapeDtypeStruct((B, 1, A1), jnp.float32),
        grid_spec=pltpu.PrefetchScalarGridSpec(
            num_scalar_prefetch=0,
            grid=(B,),                       # parallel over batch -> both TCs on v7x
            in_specs=in_specs,
            out_specs=out_specs,
        ),
        compiler_params=pltpu.CompilerParams(
            dimension_semantics=("parallel",)),
    )(emb, mask,
      p["emb_ln_g"], p["emb_ln_b"],
      p["wqkv"], p["bqkv"], p["wo"], p["bo"], p["ln1_g"], p["ln1_b"],
      p["wi"], p["bi"], p["wo2"], p["bo2"], p["ln2_g"], p["ln2_b"],
      p["pool_w"], p["pool_b"], p["head_w"], p["head_b"])


# ----------------------------- parameters -----------------------------------
def init_params(key):
    def nrm(k, shape):
        return 0.02 * jax.random.normal(k, shape, jnp.float32)

    keys = iter(jax.random.split(key, 6 + 6 * NUM_LAYERS))
    params = {
        "word_emb": nrm(next(keys), (VOCAB, HIDDEN)),
        "pos_emb": nrm(next(keys), (MAX_POS, HIDDEN)),
        "type_emb": nrm(next(keys), (2, HIDDEN)),
        "emb_ln_g": jnp.ones((HIDDEN,), jnp.float32),
        "emb_ln_b": jnp.zeros((HIDDEN,), jnp.float32),
        "layers": [],
        "pool_w": nrm(next(keys), (HIDDEN, HIDDEN)),
        "pool_b": jnp.zeros((HIDDEN,), jnp.float32),
        "policy_w": nrm(next(keys), (HIDDEN, NUM_ACTIONS)),
        "policy_b": jnp.zeros((NUM_ACTIONS,), jnp.float32),
        "value_w": nrm(next(keys), (HIDDEN, 1)),
        "value_b": jnp.zeros((1,), jnp.float32),
    }
    for _ in range(NUM_LAYERS):
        layer = {
            "wq": nrm(next(keys), (HIDDEN, HIDDEN)), "bq": jnp.zeros((HIDDEN,), jnp.float32),
            "wk": nrm(next(keys), (HIDDEN, HIDDEN)), "bk": jnp.zeros((HIDDEN,), jnp.float32),
            "wv": nrm(next(keys), (HIDDEN, HIDDEN)), "bv": jnp.zeros((HIDDEN,), jnp.float32),
            "wo": nrm(next(keys), (HIDDEN, HIDDEN)), "bo": jnp.zeros((HIDDEN,), jnp.float32),
            "ln1_g": jnp.ones((HIDDEN,), jnp.float32), "ln1_b": jnp.zeros((HIDDEN,), jnp.float32),
            "wi": nrm(next(keys), (HIDDEN, INTERMEDIATE)), "bi": jnp.zeros((INTERMEDIATE,), jnp.float32),
            "wo2": nrm(next(keys), (INTERMEDIATE, HIDDEN)), "bo2": jnp.zeros((HIDDEN,), jnp.float32),
            "ln2_g": jnp.ones((HIDDEN,), jnp.float32), "ln2_b": jnp.zeros((HIDDEN,), jnp.float32),
        }
        params["layers"].append(layer)
    return params


def pack_params(params):
    """Stack per-layer weights along a leading L axis and fuse QKV / heads."""
    H, I = HIDDEN, INTERMEDIATE
    layers = params["layers"]

    def stack(fn):
        return jnp.stack([fn(lyr) for lyr in layers], axis=0)

    return {
        "word_emb": params["word_emb"],
        "pos_emb": params["pos_emb"],
        "type_emb": params["type_emb"],
        "emb_ln_g": params["emb_ln_g"].reshape(1, H),
        "emb_ln_b": params["emb_ln_b"].reshape(1, H),
        "wqkv": stack(lambda l: jnp.concatenate([l["wq"], l["wk"], l["wv"]], axis=1)),
        "bqkv": stack(lambda l: jnp.concatenate([l["bq"], l["bk"], l["bv"]]).reshape(1, 3 * H)),
        "wo": stack(lambda l: l["wo"]),
        "bo": stack(lambda l: l["bo"].reshape(1, H)),
        "ln1_g": stack(lambda l: l["ln1_g"].reshape(1, H)),
        "ln1_b": stack(lambda l: l["ln1_b"].reshape(1, H)),
        "wi": stack(lambda l: l["wi"]),
        "bi": stack(lambda l: l["bi"].reshape(1, I)),
        "wo2": stack(lambda l: l["wo2"]),
        "bo2": stack(lambda l: l["bo2"].reshape(1, H)),
        "ln2_g": stack(lambda l: l["ln2_g"].reshape(1, H)),
        "ln2_b": stack(lambda l: l["ln2_b"].reshape(1, H)),
        "pool_w": params["pool_w"],
        "pool_b": params["pool_b"].reshape(1, H),
        "head_w": jnp.concatenate([params["policy_w"], params["value_w"]], axis=1),
        "head_b": jnp.concatenate([params["policy_b"], params["value_b"]]).reshape(1, HEAD_OUT),
    }


# ----------------------------- forward pass ---------------------------------
def forward(packed, input_ids, attention_mask):
    B, S = input_ids.shape

    # Embedding gathers are glue (not the hot path); everything else is Pallas.
    tok = packed["word_emb"][input_ids]                       # (B, S, H)
    pos = packed["pos_emb"][jnp.arange(S)][None, :, :]        # (1, S, H)
    typ = packed["type_emb"][0][None, None, :]                # token_type_ids = 0
    emb = (tok + pos + typ).astype(jnp.float32)               # (B, S, H)

    mask = attention_mask.astype(jnp.float32).reshape(B, 1, S)

    head = bert_ppo_fused(emb, mask, packed)                  # (B, 1, A+1)
    head = head.reshape(B, HEAD_OUT)
    logits = head[:, :NUM_ACTIONS]                            # (B, A)
    value = head[:, NUM_ACTIONS]                              # (B,)
    return logits, value


# ----------------------------- main ------------------------------------------
if __name__ == "__main__":
    key = jax.random.PRNGKey(0)
    k_param, k_ids = jax.random.split(key)
    params = init_params(k_param)
    packed = pack_params(params)

    input_ids = jax.random.randint(k_ids, (BATCH, SEQ), 0, VOCAB, dtype=jnp.int32)
    attention_mask = jnp.array(
        [[1, 1, 1, 1, 1, 1, 1, 1],
         [1, 1, 1, 1, 1, 1, 0, 0]], dtype=jnp.int32)

    logits, value = jax.jit(forward)(packed, input_ids, attention_mask)
    jax.block_until_ready((logits, value))

    assert logits.shape == (BATCH, NUM_ACTIONS), logits.shape
    assert value.shape == (BATCH,), value.shape
    assert jnp.all(jnp.isfinite(logits)) and jnp.all(jnp.isfinite(value))
    print("KERNEL_OK")
</pallas_src>

<mosaic_0001>
module attributes {stable_mosaic.version = 11 : i64} {
  func.func @_fused_model_kernel(%arg0: i32, %arg1: memref<1x8x32xf32, #tpu.memory_space<vmem>>, %arg2: memref<1x1x8xf32, #tpu.memory_space<vmem>>, %arg3: memref<1x32xf32, #tpu.memory_space<vmem>>, %arg4: memref<1x32xf32, #tpu.memory_space<vmem>>, %arg5: memref<2x32x96xf32, #tpu.memory_space<vmem>>, %arg6: memref<2x1x96xf32, #tpu.memory_space<vmem>>, %arg7: memref<2x32x32xf32, #tpu.memory_space<vmem>>, %arg8: memref<2x1x32xf32, #tpu.memory_space<vmem>>, %arg9: memref<2x1x32xf32, #tpu.memory_space<vmem>>, %arg10: memref<2x1x32xf32, #tpu.memory_space<vmem>>, %arg11: memref<2x32x128xf32, #tpu.memory_space<vmem>>, %arg12: memref<2x1x128xf32, #tpu.memory_space<vmem>>, %arg13: memref<2x128x32xf32, #tpu.memory_space<vmem>>, %arg14: memref<2x1x32xf32, #tpu.memory_space<vmem>>, %arg15: memref<2x1x32xf32, #tpu.memory_space<vmem>>, %arg16: memref<2x1x32xf32, #tpu.memory_space<vmem>>, %arg17: memref<32x32xf32, #tpu.memory_space<vmem>>, %arg18: memref<1x32xf32, #tpu.memory_space<vmem>>, %arg19: memref<32x5xf32, #tpu.memory_space<vmem>>, %arg20: memref<1x5xf32, #tpu.memory_space<vmem>>, %arg21: memref<1x1x5xf32, #tpu.memory_space<vmem>>) attributes {dimension_semantics = [#tpu.dimension_semantics<parallel>], iteration_bounds = array<i64: 2>, scalar_prefetch = 0 : i64, scratch_operands = 0 : i64, tpu.core_type = #tpu.core_type<tc>, window_params = [{transform_indices = @transform_0, window_bounds = array<i64: 1, 8, 32>}, {transform_indices = @transform_1, window_bounds = array<i64: 1, 1, 8>}, {pipeline_mode = #tpu.pipeline_mode<synchronous>, transform_indices = @transform_2, window_bounds = array<i64: 1, 32>}, {pipeline_mode = #tpu.pipeline_mode<synchronous>, transform_indices = @transform_3, window_bounds = array<i64: 1, 32>}, {pipeline_mode = #tpu.pipeline_mode<synchronous>, transform_indices = @transform_4, window_bounds = array<i64: 2, 32, 96>}, {pipeline_mode = #tpu.pipeline_mode<synchronous>, transform_indices = @transform_5, window_bounds = array<i64: 2, 1, 96>}, {pipeline_mode = #tpu.pipeline_mode<synchronous>, transform_indices = @transform_6, window_bounds = array<i64: 2, 32, 32>}, {pipeline_mode = #tpu.pipeline_mode<synchronous>, transform_indices = @transform_7, window_bounds = array<i64: 2, 1, 32>}, {pipeline_mode = #tpu.pipeline_mode<synchronous>, transform_indices = @transform_8, window_bounds = array<i64: 2, 1, 32>}, {pipeline_mode = #tpu.pipeline_mode<synchronous>, transform_indices = @transform_9, window_bounds = array<i64: 2, 1, 32>}, {pipeline_mode = #tpu.pipeline_mode<synchronous>, transform_indices = @transform_10, window_bounds = array<i64: 2, 32, 128>}, {pipeline_mode = #tpu.pipeline_mode<synchronous>, transform_indices = @transform_11, window_bounds = array<i64: 2, 1, 128>}, {pipeline_mode = #tpu.pipeline_mode<synchronous>, transform_indices = @transform_12, window_bounds = array<i64: 2, 128, 32>}, {pipeline_mode = #tpu.pipeline_mode<synchronous>, transform_indices = @transform_13, window_bounds = array<i64: 2, 1, 32>}, {pipeline_mode = #tpu.pipeline_mode<synchronous>, transform_indices = @transform_14, window_bounds = array<i64: 2, 1, 32>}, {pipeline_mode = #tpu.pipeline_mode<synchronous>, transform_indices = @transform_15, window_bounds = array<i64: 2, 1, 32>}, {pipeline_mode = #tpu.pipeline_mode<synchronous>, transform_indices = @transform_16, window_bounds = array<i64: 32, 32>}, {pipeline_mode = #tpu.pipeline_mode<synchronous>, transform_indices = @transform_17, window_bounds = array<i64: 1, 32>}, {pipeline_mode = #tpu.pipeline_mode<synchronous>, transform_indices = @transform_18, window_bounds = array<i64: 32, 5>}, {pipeline_mode = #tpu.pipeline_mode<synchronous>, transform_indices = @transform_19, window_bounds = array<i64: 1, 5>}, {transform_indices = @transform_20, window_bounds = array<i64: 1, 1, 5>}]} {
    %c0 = arith.constant 0 : index
    %c0_0 = arith.constant 0 : index
    %c0_1 = arith.constant 0 : index
    %0 = vector.load %arg1[%c0, %c0_0, %c0_1] : memref<1x8x32xf32, #tpu.memory_space<vmem>>, vector<1x8x32xf32>
    %1 = vector.shape_cast %0 : vector<1x8x32xf32> to vector<8x32xf32>
    %c0_2 = arith.constant 0 : index
    %c0_3 = arith.constant 0 : index
    %2 = vector.load %arg3[%c0_2, %c0_3] : memref<1x32xf32, #tpu.memory_space<vmem>>, vector<1x32xf32>
    %c0_4 = arith.constant 0 : index
    %c0_5 = arith.constant 0 : index
    %3 = vector.load %arg4[%c0_4, %c0_5] : memref<1x32xf32, #tpu.memory_space<vmem>>, vector<1x32xf32>
    %cst = arith.constant dense<0.000000e+00> : vector<8xf32>
    %4 = vector.multi_reduction <add>, %1, %cst [1] : vector<8x32xf32> to vector<8xf32>
    %5 = vector.shape_cast %4 : vector<8xf32> to vector<8x1xf32>
    %cst_6 = arith.constant 3.200000e+01 : f32
    %6 = vector.broadcast %cst_6 : f32 to vector<8x1xf32>
    %7 = arith.divf %5, %6 : vector<8x1xf32>
    %8 = vector.broadcast %7 : vector<8x1xf32> to vector<8x32xf32>
    %9 = arith.subf %1, %8 : vector<8x32xf32>
    %10 = arith.mulf %9, %9 : vector<8x32xf32>
    %cst_7 = arith.constant dense<0.000000e+00> : vector<8xf32>
    %11 = vector.multi_reduction <add>, %10, %cst_7 [1] : vector<8x32xf32> to vector<8xf32>
    %12 = vector.shape_cast %11 : vector<8xf32> to vector<8x1xf32>
    %cst_8 = arith.constant 3.200000e+01 : f32
    %13 = vector.broadcast %cst_8 : f32 to vector<8x1xf32>
    %14 = arith.divf %12, %13 : vector<8x1xf32>
    %15 = vector.broadcast %7 : vector<8x1xf32> to vector<8x32xf32>
    %16 = arith.subf %1, %15 : vector<8x32xf32>
    %cst_9 = arith.constant 9.99999996E-13 : f32
    %17 = vector.broadcast %cst_9 : f32 to vector<8x1xf32>
    %18 = arith.addf %14, %17 : vector<8x1xf32>
    %19 = math.rsqrt %18 : vector<8x1xf32>
    %20 = vector.broadcast %19 : vector<8x1xf32> to vector<8x32xf32>
    %21 = arith.mulf %16, %20 : vector<8x32xf32>
    %22 = vector.broadcast %2 : vector<1x32xf32> to vector<8x32xf32>
    %23 = arith.mulf %21, %22 : vector<8x32xf32>
    %24 = vector.broadcast %3 : vector<1x32xf32> to vector<8x32xf32>
    %25 = arith.addf %23, %24 : vector<8x32xf32>
    %c0_10 = arith.constant 0 : index
    %c0_11 = arith.constant 0 : index
    %c0_12 = arith.constant 0 : index
    %26 = vector.load %arg2[%c0_10, %c0_11, %c0_12] : memref<1x1x8xf32, #tpu.memory_space<vmem>>, vector<1x1x8xf32>
    %27 = vector.shape_cast %26 : vector<1x1x8xf32> to vector<1x8xf32>
    %cst_13 = arith.constant 1.000000e+00 : f32
    %28 = vector.broadcast %cst_13 : f32 to vector<1x8xf32>
    %29 = arith.subf %28, %27 : vector<1x8xf32>
    %cst_14 = arith.constant -1.000000e+09 : f32
    %30 = vector.broadcast %cst_14 : f32 to vector<1x8xf32>
    %31 = arith.mulf %29, %30 : vector<1x8xf32>
    %c0_15 = arith.constant 0 : index
    %c0_16 = arith.constant 0 : index
    %c0_17 = arith.constant 0 : index
    %32 = vector.load %arg5[%c0_15, %c0_16, %c0_17] : memref<2x32x96xf32, #tpu.memory_space<vmem>>, vector<1x32x96xf32>
    %33 = vector.shape_cast %32 : vector<1x32x96xf32> to vector<32x96xf32>
    %cst_18 = arith.constant dense<0.000000e+00> : vector<8x96xf32>
    %34 = tpu.matmul %25, %33, %cst_18 {dimension_numbers = #tpu.dot_dimension_numbers<[1], [0], [0], [1], [0, 0, 1, 1], [], []>} : vector<8x32xf32>, vector<32x96xf32>, vector<8x96xf32> -> vector<8x96xf32>
    %c0_19 = arith.constant 0 : index
    %c0_20 = arith.constant 0 : index
    %c0_21 = arith.constant 0 : index
    %35 = vector.load %arg6[%c0_19, %c0_20, %c0_21] : memref<2x1x96xf32, #tpu.memory_space<vmem>>, vector<1x1x96xf32>
    %36 = vector.shape_cast %35 : vector<1x1x96xf32> to vector<1x96xf32>
    %37 = vector.broadcast %36 : vector<1x96xf32> to vector<8x96xf32>
    %38 = arith.addf %34, %37 : vector<8x96xf32>
    %c0_22 = arith.constant 0 : index
    %c0_23 = arith.constant 0 : index
    %c0_24 = arith.constant 0 : index
    %39 = vector.load %arg7[%c0_22, %c0_23, %c0_24] : memref<2x32x32xf32, #tpu.memory_space<vmem>>, vector<1x32x32xf32>
    %40 = vector.shape_cast %39 : vector<1x32x32xf32> to vector<32x32xf32>
    %cst_25 = arith.constant 0.000000e+00 : f32
    %41 = vector.broadcast %cst_25 : f32 to vector<8x32xf32>
    %42 = vector.extract_strided_slice %38 {offsets = [0, 0], sizes = [8, 8], strides = [1, 1]} : vector<8x96xf32> to vector<8x8xf32>
    %43 = vector.extract_strided_slice %38 {offsets = [0, 32], sizes = [8, 8], strides = [1, 1]} : vector<8x96xf32> to vector<8x8xf32>
    %44 = vector.extract_strided_slice %38 {offsets = [0, 64], sizes = [8, 8], strides = [1, 1]} : vector<8x96xf32> to vector<8x8xf32>
    %cst_26 = arith.constant dense<0.000000e+00> : vector<8x8xf32>
    %45 = tpu.matmul %42, %43, %cst_26 {dimension_numbers = #tpu.dot_dimension_numbers<[1], [1], [0], [0], [0, 0, 1, 0], [], []>} : vector<8x8xf32>, vector<8x8xf32>, vector<8x8xf32> -> vector<8x8xf32>
    %cst_27 = arith.constant 0.353553385 : f32
    %46 = vector.broadcast %cst_27 : f32 to vector<8x8xf32>
    %47 = arith.mulf %45, %46 : vector<8x8xf32>
    %48 = vector.broadcast %31 : vector<1x8xf32> to vector<8x8xf32>
    %49 = arith.addf %47, %48 : vector<8x8xf32>
    %cst_28 = arith.constant dense<0xFF800000> : vector<8xf32>
    %50 = vector.multi_reduction <maximumf>, %49, %cst_28 [1] : vector<8x8xf32> to vector<8xf32>
    %51 = vector.shape_cast %50 : vector<8xf32> to vector<8x1xf32>
    %52 = vector.broadcast %51 : vector<8x1xf32> to vector<8x8xf32>
    %53 = arith.subf %49, %52 : vector<8x8xf32>
    %54 = math.exp %53 : vector<8x8xf32>
    %cst_29 = arith.constant dense<0.000000e+00> : vector<8xf32>
    %55 = vector.multi_reduction <add>, %54, %cst_29 [1] : vector<8x8xf32> to vector<8xf32>
    %56 = vector.shape_cast %55 : vector<8xf32> to vector<8x1xf32>
    %57 = vector.broadcast %56 : vector<8x1xf32> to vector<8x8xf32>
    %58 = arith.divf %54, %57 : vector<8x8xf32>
    %cst_30 = arith.constant dense<0.000000e+00> : vector<8x8xf32>
    %59 = tpu.matmul %58, %44, %cst_30 {dimension_numbers = #tpu.dot_dimension_numbers<[1], [0], [0], [1], [0, 0, 1, 1], [], []>} : vector<8x8xf32>, vector<8x8xf32>, vector<8x8xf32> -> vector<8x8xf32>
    %60 = vector.extract_strided_slice %40 {offsets = [0, 0], sizes = [8, 32], strides = [1, 1]} : vector<32x32xf32> to vector<8x32xf32>
    %cst_31 = arith.constant dense<0.000000e+00> : vector<8x32xf32>
    %61 = tpu.matmul %59, %60, %cst_31 {dimension_numbers = #tpu.dot_dimension_numbers<[1], [0], [0], [1], [0, 0, 1, 1], [], []>} : vector<8x8xf32>, vector<8x32xf32>, vector<8x32xf32> -> vector<8x32xf32>
    %62 = arith.addf %41, %61 : vector<8x32xf32>
    %63 = vector.extract_strided_slice %38 {offsets = [0, 8], sizes = [8, 8], strides = [1, 1]} : vector<8x96xf32> to vector<8x8xf32>
    %64 = vector.extract_strided_slice %38 {offsets = [0, 40], sizes = [8, 8], strides = [1, 1]} : vector<8x96xf32> to vector<8x8xf32>
    %65 = vector.extract_strided_slice %38 {offsets = [0, 72], sizes = [8, 8], strides = [1, 1]} : vector<8x96xf32> to vector<8x8xf32>
    %cst_32 = arith.constant dense<0.000000e+00> : vector<8x8xf32>
    %66 = tpu.matmul %63, %64, %cst_32 {dimension_numbers = #tpu.dot_dimension_numbers<[1], [1], [0], [0], [0, 0, 1, 0], [], []>} : vector<8x8xf32>, vector<8x8xf32>, vector<8x8xf32> -> vector<8x8xf32>
    %cst_33 = arith.constant 0.353553385 : f32
    %67 = vector.broadcast %cst_33 : f32 to vector<8x8xf32>
    %68 = arith.mulf %66, %67 : vector<8x8xf32>
    %69 = vector.broadcast %31 : vector<1x8xf32> to vector<8x8xf32>
    %70 = arith.addf %68, %69 : vector<8x8xf32>
    %cst_34 = arith.constant dense<0xFF800000> : vector<8xf32>
    %71 = vector.multi_reduction <maximumf>, %70, %cst_34 [1] : vector<8x8xf32> to vector<8xf32>
    %72 = vector.shape_cast %71 : vector<8xf32> to vector<8x1xf32>
    %73 = vector.broadcast %72 : vector<8x1xf32> to vector<8x8xf32>
    %74 = arith.subf %70, %73 : vector<8x8xf32>
    %75 = math.exp %74 : vector<8x8xf32>
    %cst_35 = arith.constant dense<0.000000e+00> : vector<8xf32>
    %76 = vector.multi_reduction <add>, %75, %cst_35 [1] : vector<8x8xf32> to vector<8xf32>
    %77 = vector.shape_cast %76 : vector<8xf32> to vector<8x1xf32>
    %78 = vector.broadcast %77 : vector<8x1xf32> to vector<8x8xf32>
    %79 = arith.divf %75, %78 : vector<8x8xf32>
    %cst_36 = arith.constant dense<0.000000e+00> : vector<8x8xf32>
    %80 = tpu.matmul %79, %65, %cst_36 {dimension_numbers = #tpu.dot_dimension_numbers<[1], [0], [0], [1], [0, 0, 1, 1], [], []>} : vector<8x8xf32>, vector<8x8xf32>, vector<8x8xf32> -> vector<8x8xf32>
    %81 = vector.extract_strided_slice %40 {offsets = [8, 0], sizes = [8, 32], strides = [1, 1]} : vector<32x32xf32> to vector<8x32xf32>
    %cst_37 = arith.constant dense<0.000000e+00> : vector<8x32xf32>
    %82 = tpu.matmul %80, %81, %cst_37 {dimension_numbers = #tpu.dot_dimension_numbers<[1], [0], [0], [1], [0, 0, 1, 1], [], []>} : vector<8x8xf32>, vector<8x32xf32>, vector<8x32xf32> -> vector<8x32xf32>
    %83 = arith.addf %62, %82 : vector<8x32xf32>
    %84 = vector.extract_strided_slice %38 {offsets = [0, 16], sizes = [8, 8], strides = [1, 1]} : vector<8x96xf32> to vector<8x8xf32>
    %85 = vector.extract_strided_slice %38 {offsets = [0, 48], sizes = [8, 8], strides = [1, 1]} : vector<8x96xf32> to vector<8x8xf32>
    %86 = vector.extract_strided_slice %38 {offsets = [0, 80], sizes = [8, 8], strides = [1, 1]} : vector<8x96xf32> to vector<8x8xf32>
    %cst_38 = arith.constant dense<0.000000e+00> : vector<8x8xf32>
    %87 = tpu.matmul %84, %85, %cst_38 {dimension_numbers = #tpu.dot_dimension_numbers<[1], [1], [0], [0], [0, 0, 1, 0], [], []>} : vector<8x8xf32>, vector<8x8xf32>, vector<8x8xf32> -> vector<8x8xf32>
    %cst_39 = arith.constant 0.353553385 : f32
    %88 = vector.broadcast %cst_39 : f32 to vector<8x8xf32>
    %89 = arith.mulf %87, %88 : vector<8x8xf32>
    %90 = vector.broadcast %31 : vector<1x8xf32> to vector<8x8xf32>
    %91 = arith.addf %89, %90 : vector<8x8xf32>
    %cst_40 = arith.constant dense<0xFF800000> : vector<8xf32>
    %92 = vector.multi_reduction <maximumf>, %91, %cst_40 [1] : vector<8x8xf32> to vector<8xf32>
    %93 = vector.shape_cast %92 : vector<8xf32> to vector<8x1xf32>
    %94 = vector.broadcast %93 : vector<8x1xf32> to vector<8x8xf32>
    %95 = arith.subf %91, %94 : vector<8x8xf32>
    %96 = math.exp %95 : vector<8x8xf32>
    %cst_41 = arith.constant dense<0.000000e+00> : vector<8xf32>
    %97 = vector.multi_reduction <add>, %96, %cst_41 [1] : vector<8x8xf32> to vector<8xf32>
    %98 = vector.shape_cast %97 : vector<8xf32> to vector<8x1xf32>
    %99 = vector.broadcast %98 : vector<8x1xf32> to vector<8x8xf32>
    %100 = arith.divf %96, %99 : vector<8x8xf32>
    %cst_42 = arith.constant dense<0.000000e+00> : vector<8x8xf32>
    %101 = tpu.matmul %100, %86, %cst_42 {dimension_numbers = #tpu.dot_dimension_numbers<[1], [0], [0], [1], [0, 0, 1, 1], [], []>} : vector<8x8xf32>, vector<8x8xf32>, vector<8x8xf32> -> vector<8x8xf32>
    %102 = vector.extract_strided_slice %40 {offsets = [16, 0], sizes = [8, 32], strides = [1, 1]} : vector<32x32xf32> to vector<8x32xf32>
    %cst_43 = arith.constant dense<0.000000e+00> : vector<8x32xf32>
    %103 = tpu.matmul %101, %102, %cst_43 {dimension_numbers = #tpu.dot_dimension_numbers<[1], [0], [0], [1], [0, 0, 1, 1], [], []>} : vector<8x8xf32>, vector<8x32xf32>, vector<8x32xf32> -> vector<8x32xf32>
    %104 = arith.addf %83, %103 : vector<8x32xf32>
    %105 = vector.extract_strided_slice %38 {offsets = [0, 24], sizes = [8, 8], strides = [1, 1]} : vector<8x96xf32> to vector<8x8xf32>
    %106 = vector.extract_strided_slice %38 {offsets = [0, 56], sizes = [8, 8], strides = [1, 1]} : vector<8x96xf32> to vector<8x8xf32>
    %107 = vector.extract_strided_slice %38 {offsets = [0, 88], sizes = [8, 8], strides = [1, 1]} : vector<8x96xf32> to vector<8x8xf32>
    %cst_44 = arith.constant dense<0.000000e+00> : vector<8x8xf32>
    %108 = tpu.matmul %105, %106, %cst_44 {dimension_numbers = #tpu.dot_dimension_numbers<[1], [1], [0], [0], [0, 0, 1, 0], [], []>} : vector<8x8xf32>, vector<8x8xf32>, vector<8x8xf32> -> vector<8x8xf32>
    %cst_45 = arith.constant 0.353553385 : f32
    %109 = vector.broadcast %cst_45 : f32 to vector<8x8xf32>
    %110 = arith.mulf %108, %109 : vector<8x8xf32>
    %111 = vector.broadcast %31 : vector<1x8xf32> to vector<8x8xf32>
    %112 = arith.addf %110, %111 : vector<8x8xf32>
    %cst_46 = arith.constant dense<0xFF800000> : vector<8xf32>
    %113 = vector.multi_reduction <maximumf>, %112, %cst_46 [1] : vector<8x8xf32> to vector<8xf32>
    %114 = vector.shape_cast %113 : vector<8xf32> to vector<8x1xf32>
    %115 = vector.broadcast %114 : vector<8x1xf32> to vector<8x8xf32>
    %116 = arith.subf %112, %115 : vector<8x8xf32>
    %117 = math.exp %116 : vector<8x8xf32>
    %cst_47 = arith.constant dense<0.000000e+00> : vector<8xf32>
    %118 = vector.multi_reduction <add>, %117, %cst_47 [1] : vector<8x8xf32> to vector<8xf32>
    %119 = vector.shape_cast %118 : vector<8xf32> to vector<8x1xf32>
    %120 = vector.broadcast %119 : vector<8x1xf32> to vector<8x8xf32>
    %121 = arith.divf %117, %120 : vector<8x8xf32>
    %cst_48 = arith.constant dense<0.000000e+00> : vector<8x8xf32>
    %122 = tpu.matmul %121, %107, %cst_48 {dimension_numbers = #tpu.dot_dimension_numbers<[1], [0], [0], [1], [0, 0, 1, 1], [], []>} : vector<8x8xf32>, vector<8x8xf32>, vector<8x8xf32> -> vector<8x8xf32>
    %123 = vector.extract_strided_slice %40 {offsets = [24, 0], sizes = [8, 32], strides = [1, 1]} : vector<32x32xf32> to vector<8x32xf32>
    %cst_49 = arith.constant dense<0.000000e+00> : vector<8x32xf32>
    %124 = tpu.matmul %122, %123, %cst_49 {dimension_numbers = #tpu.dot_dimension_numbers<[1], [0], [0], [1], [0, 0, 1, 1], [], []>} : vector<8x8xf32>, vector<8x32xf32>, vector<8x32xf32> -> vector<8x32xf32>
    %125 = arith.addf %104, %124 : vector<8x32xf32>
    %c0_50 = arith.constant 0 : index
    %c0_51 = arith.constant 0 : index
    %c0_52 = arith.constant 0 : index
    %126 = vector.load %arg8[%c0_50, %c0_51, %c0_52] : memref<2x1x32xf32, #tpu.memory_space<vmem>>, vector<1x1x32xf32>
    %127 = vector.shape_cast %126 : vector<1x1x32xf32> to vector<1x32xf32>
    %128 = vector.broadcast %127 : vector<1x32xf32> to vector<8x32xf32>
    %129 = arith.addf %125, %128 : vector<8x32xf32>
    %130 = arith.addf %129, %25 : vector<8x32xf32>
    %c0_53 = arith.constant 0 : index
    %c0_54 = arith.constant 0 : index
    %c0_55 = arith.constant 0 : index
    %131 = vector.load %arg9[%c0_53, %c0_54, %c0_55] : memref<2x1x32xf32, #tpu.memory_space<vmem>>, vector<1x1x32xf32>
    %132 = vector.shape_cast %131 : vector<1x1x32xf32> to vector<1x32xf32>
    %c0_56 = arith.constant 0 : index
    %c0_57 = arith.constant 0 : index
    %c0_58 = arith.constant 0 : index
    %133 = vector.load %arg10[%c0_56, %c0_57, %c0_58] : memref<2x1x32xf32, #tpu.memory_space<vmem>>, vector<1x1x32xf32>
    %134 = vector.shape_cast %133 : vector<1x1x32xf32> to vector<1x32xf32>
    %cst_59 = arith.constant dense<0.000000e+00> : vector<8xf32>
    %135 = vector.multi_reduction <add>, %130, %cst_59 [1] : vector<8x32xf32> to vector<8xf32>
    %136 = vector.shape_cast %135 : vector<8xf32> to vector<8x1xf32>
    %cst_60 = arith.constant 3.200000e+01 : f32
    %137 = vector.broadcast %cst_60 : f32 to vector<8x1xf32>
    %138 = arith.divf %136, %137 : vector<8x1xf32>
    %139 = vector.broadcast %138 : vector<8x1xf32> to vector<8x32xf32>
    %140 = arith.subf %130, %139 : vector<8x32xf32>
    %141 = arith.mulf %140, %140 : vector<8x32xf32>
    %cst_61 = arith.constant dense<0.000000e+00> : vector<8xf32>
    %142 = vector.multi_reduction <add>, %141, %cst_61 [1] : vector<8x32xf32> to vector<8xf32>
    %143 = vector.shape_cast %142 : vector<8xf32> to vector<8x1xf32>
    %cst_62 = arith.constant 3.200000e+01 : f32
    %144 = vector.broadcast %cst_62 : f32 to vector<8x1xf32>
    %145 = arith.divf %143, %144 : vector<8x1xf32>
    %146 = vector.broadcast %138 : vector<8x1xf32> to vector<8x32xf32>
    %147 = arith.subf %130, %146 : vector<8x32xf32>
    %cst_63 = arith.constant 9.99999996E-13 : f32
    %148 = vector.broadcast %cst_63 : f32 to vector<8x1xf32>
    %149 = arith.addf %145, %148 : vector<8x1xf32>
    %150 = math.rsqrt %149 : vector<8x1xf32>
    %151 = vector.broadcast %150 : vector<8x1xf32> to vector<8x32xf32>
    %152 = arith.mulf %147, %151 : vector<8x32xf32>
    %153 = vector.broadcast %132 : vector<1x32xf32> to vector<8x32xf32>
    %154 = arith.mulf %152, %153 : vector<8x32xf32>
    %155 = vector.broadcast %134 : vector<1x32xf32> to vector<8x32xf32>
    %156 = arith.addf %154, %155 : vector<8x32xf32>
    %c0_64 = arith.constant 0 : index
    %c0_65 = arith.constant 0 : index
    %c0_66 = arith.constant 0 : index
    %157 = vector.load %arg11[%c0_64, %c0_65, %c0_66] : memref<2x32x128xf32, #tpu.memory_space<vmem>>, vector<1x32x128xf32>
    %158 = vector.shape_cast %157 : vector<1x32x128xf32> to vector<32x128xf32>
    %cst_67 = arith.constant dense<0.000000e+00> : vector<8x128xf32>
    %159 = tpu.matmul %156, %158, %cst_67 {dimension_numbers = #tpu.dot_dimension_numbers<[1], [0], [0], [1], [0, 0, 1, 1], [], []>} : vector<8x32xf32>, vector<32x128xf32>, vector<8x128xf32> -> vector<8x128xf32>
    %c0_68 = arith.constant 0 : index
    %c0_69 = arith.constant 0 : index
    %c0_70 = arith.constant 0 : index
    %160 = vector.load %arg12[%c0_68, %c0_69, %c0_70] : memref<2x1x128xf32, #tpu.memory_space<vmem>>, vector<1x1x128xf32>
    %161 = vector.shape_cast %160 : vector<1x1x128xf32> to vector<1x128xf32>
    %162 = vector.broadcast %161 : vector<1x128xf32> to vector<8x128xf32>
    %163 = arith.addf %159, %162 : vector<8x128xf32>
    %cst_71 = arith.constant 5.000000e-01 : f32
    %164 = vector.broadcast %cst_71 : f32 to vector<8x128xf32>
    %165 = arith.mulf %164, %163 : vector<8x128xf32>
    %cst_72 = arith.constant 4.471500e-02 : f32
    %166 = vector.broadcast %cst_72 : f32 to vector<8x128xf32>
    %167 = arith.mulf %166, %163 : vector<8x128xf32>
    %168 = arith.mulf %167, %163 : vector<8x128xf32>
    %169 = arith.mulf %168, %163 : vector<8x128xf32>
    %170 = arith.addf %163, %169 : vector<8x128xf32>
    %cst_73 = arith.constant 0.797884583 : f32
    %171 = vector.broadcast %cst_73 : f32 to vector<8x128xf32>
    %172 = arith.mulf %171, %170 : vector<8x128xf32>
    %173 = math.tanh %172 : vector<8x128xf32>
    %cst_74 = arith.constant 1.000000e+00 : f32
    %174 = vector.broadcast %cst_74 : f32 to vector<8x128xf32>
    %175 = arith.addf %174, %173 : vector<8x128xf32>
    %176 = arith.mulf %165, %175 : vector<8x128xf32>
    %c0_75 = arith.constant 0 : index
    %c0_76 = arith.constant 0 : index
    %c0_77 = arith.constant 0 : index
    %177 = vector.load %arg13[%c0_75, %c0_76, %c0_77] : memref<2x128x32xf32, #tpu.memory_space<vmem>>, vector<1x128x32xf32>
    %178 = vector.shape_cast %177 : vector<1x128x32xf32> to vector<128x32xf32>
    %cst_78 = arith.constant dense<0.000000e+00> : vector<8x32xf32>
    %179 = tpu.matmul %176, %178, %cst_78 {dimension_numbers = #tpu.dot_dimension_numbers<[1], [0], [0], [1], [0, 0, 1, 1], [], []>} : vector<8x128xf32>, vector<128x32xf32>, vector<8x32xf32> -> vector<8x32xf32>
    %c0_79 = arith.constant 0 : index
    %c0_80 = arith.constant 0 : index
    %c0_81 = arith.constant 0 : index
    %180 = vector.load %arg14[%c0_79, %c0_80, %c0_81] : memref<2x1x32xf32, #tpu.memory_space<vmem>>, vector<1x1x32xf32>
    %181 = vector.shape_cast %180 : vector<1x1x32xf32> to vector<1x32xf32>
    %182 = vector.broadcast %181 : vector<1x32xf32> to vector<8x32xf32>
    %183 = arith.addf %179, %182 : vector<8x32xf32>
    %184 = arith.addf %183, %156 : vector<8x32xf32>
    %c0_82 = arith.constant 0 : index
    %c0_83 = arith.constant 0 : index
    %c0_84 = arith.constant 0 : index
    %185 = vector.load %arg15[%c0_82, %c0_83, %c0_84] : memref<2x1x32xf32, #tpu.memory_space<vmem>>, vector<1x1x32xf32>
    %186 = vector.shape_cast %185 : vector<1x1x32xf32> to vector<1x32xf32>
    %c0_85 = arith.constant 0 : index
    %c0_86 = arith.constant 0 : index
    %c0_87 = arith.constant 0 : index
    %187 = vector.load %arg16[%c0_85, %c0_86, %c0_87] : memref<2x1x32xf32, #tpu.memory_space<vmem>>, vector<1x1x32xf32>
    %188 = vector.shape_cast %187 : vector<1x1x32xf32> to vector<1x32xf32>
    %cst_88 = arith.constant dense<0.000000e+00> : vector<8xf32>
    %189 = vector.multi_reduction <add>, %184, %cst_88 [1] : vector<8x32xf32> to vector<8xf32>
    %190 = vector.shape_cast %189 : vector<8xf32> to vector<8x1xf32>
    %cst_89 = arith.constant 3.200000e+01 : f32
    %191 = vector.broadcast %cst_89 : f32 to vector<8x1xf32>
    %192 = arith.divf %190, %191 : vector<8x1xf32>
    %193 = vector.broadcast %192 : vector<8x1xf32> to vector<8x32xf32>
    %194 = arith.subf %184, %193 : vector<8x32xf32>
    %195 = arith.mulf %194, %194 : vector<8x32xf32>
    %cst_90 = arith.constant dense<0.000000e+00> : vector<8xf32>
    %196 = vector.multi_reduction <add>, %195, %cst_90 [1] : vector<8x32xf32> to vector<8xf32>
    %197 = vector.shape_cast %196 : vector<8xf32> to vector<8x1xf32>
    %cst_91 = arith.constant 3.200000e+01 : f32
    %198 = vector.broadcast %cst_91 : f32 to vector<8x1xf32>
    %199 = arith.divf %197, %198 : vector<8x1xf32>
    %200 = vector.broadcast %192 : vector<8x1xf32> to vector<8x32xf32>
    %201 = arith.subf %184, %200 : vector<8x32xf32>
    %cst_92 = arith.constant 9.99999996E-13 : f32
    %202 = vector.broadcast %cst_92 : f32 to vector<8x1xf32>
    %203 = arith.addf %199, %202 : vector<8x1xf32>
    %204 = math.rsqrt %203 : vector<8x1xf32>
    %205 = vector.broadcast %204 : vector<8x1xf32> to vector<8x32xf32>
    %206 = arith.mulf %201, %205 : vector<8x32xf32>
    %207 = vector.broadcast %186 : vector<1x32xf32> to vector<8x32xf32>
    %208 = arith.mulf %206, %207 : vector<8x32xf32>
    %209 = vector.broadcast %188 : vector<1x32xf32> to vector<8x32xf32>
    %210 = arith.addf %208, %209 : vector<8x32xf32>
    %c1 = arith.constant 1 : index
    %c0_93 = arith.constant 0 : index
    %c0_94 = arith.constant 0 : index
    %211 = vector.load %arg5[%c1, %c0_93, %c0_94] : memref<2x32x96xf32, #tpu.memory_space<vmem>>, vector<1x32x96xf32>
    %212 = vector.shape_cast %211 : vector<1x32x96xf32> to vector<32x96xf32>
    %cst_95 = arith.constant dense<0.000000e+00> : vector<8x96xf32>
    %213 = tpu.matmul %210, %212, %cst_95 {dimension_numbers = #tpu.dot_dimension_numbers<[1], [0], [0], [1], [0, 0, 1, 1], [], []>} : vector<8x32xf32>, vector<32x96xf32>, vector<8x96xf32> -> vector<8x96xf32>
    %c1_96 = arith.constant 1 : index
    %c0_97 = arith.constant 0 : index
    %c0_98 = arith.constant 0 : index
    %214 = vector.load %arg6[%c1_96, %c0_97, %c0_98] : memref<2x1x96xf32, #tpu.memory_space<vmem>>, vector<1x1x96xf32>
    %215 = vector.shape_cast %214 : vector<1x1x96xf32> to vector<1x96xf32>
    %216 = vector.broadcast %215 : vector<1x96xf32> to vector<8x96xf32>
    %217 = arith.addf %213, %216 : vector<8x96xf32>
    %c1_99 = arith.constant 1 : index
    %c0_100 = arith.constant 0 : index
    %c0_101 = arith.constant 0 : index
    %218 = vector.load %arg7[%c1_99, %c0_100, %c0_101] : memref<2x32x32xf32, #tpu.memory_space<vmem>>, vector<1x32x32xf32>
    %219 = vector.shape_cast %218 : vector<1x32x32xf32> to vector<32x32xf32>
    %cst_102 = arith.constant 0.000000e+00 : f32
    %220 = vector.broadcast %cst_102 : f32 to vector<8x32xf32>
    %221 = vector.extract_strided_slice %217 {offsets = [0, 0], sizes = [8, 8], strides = [1, 1]} : vector<8x96xf32> to vector<8x8xf32>
    %222 = vector.extract_strided_slice %217 {offsets = [0, 32], sizes = [8, 8], strides = [1, 1]} : vector<8x96xf32> to vector<8x8xf32>
    %223 = vector.extract_strided_slice %217 {offsets = [0, 64], sizes = [8, 8], strides = [1, 1]} : vector<8x96xf32> to vector<8x8xf32>
    %cst_103 = arith.constant dense<0.000000e+00> : vector<8x8xf32>
    %224 = tpu.matmul %221, %222, %cst_103 {dimension_numbers = #tpu.dot_dimension_numbers<[1], [1], [0], [0], [0, 0, 1, 0], [], []>} : vector<8x8xf32>, vector<8x8xf32>, vector<8x8xf32> -> vector<8x8xf32>
    %cst_104 = arith.constant 0.353553385 : f32
    %225 = vector.broadcast %cst_104 : f32 to vector<8x8xf32>
    %226 = arith.mulf %224, %225 : vector<8x8xf32>
    %227 = vector.broadcast %31 : vector<1x8xf32> to vector<8x8xf32>
    %228 = arith.addf %226, %227 : vector<8x8xf32>
    %cst_105 = arith.constant dense<0xFF800000> : vector<8xf32>
    %229 = vector.multi_reduction <maximumf>, %228, %cst_105 [1] : vector<8x8xf32> to vector<8xf32>
    %230 = vector.shape_cast %229 : vector<8xf32> to vector<8x1xf32>
    %231 = vector.broadcast %230 : vector<8x1xf32> to vector<8x8xf32>
    %232 = arith.subf %228, %231 : vector<8x8xf32>
    %233 = math.exp %232 : vector<8x8xf32>
    %cst_106 = arith.constant dense<0.000000e+00> : vector<8xf32>
    %234 = vector.multi_reduction <add>, %233, %cst_106 [1] : vector<8x8xf32> to vector<8xf32>
    %235 = vector.shape_cast %234 : vector<8xf32> to vector<8x1xf32>
    %236 = vector.broadcast %235 : vector<8x1xf32> to vector<8x8xf32>
    %237 = arith.divf %233, %236 : vector<8x8xf32>
    %cst_107 = arith.constant dense<0.000000e+00> : vector<8x8xf32>
    %238 = tpu.matmul %237, %223, %cst_107 {dimension_numbers = #tpu.dot_dimension_numbers<[1], [0], [0], [1], [0, 0, 1, 1], [], []>} : vector<8x8xf32>, vector<8x8xf32>, vector<8x8xf32> -> vector<8x8xf32>
    %239 = vector.extract_strided_slice %219 {offsets = [0, 0], sizes = [8, 32], strides = [1, 1]} : vector<32x32xf32> to vector<8x32xf32>
    %cst_108 = arith.constant dense<0.000000e+00> : vector<8x32xf32>
    %240 = tpu.matmul %238, %239, %cst_108 {dimension_numbers = #tpu.dot_dimension_numbers<[1], [0], [0], [1], [0, 0, 1, 1], [], []>} : vector<8x8xf32>, vector<8x32xf32>, vector<8x32xf32> -> vector<8x32xf32>
    %241 = arith.addf %220, %240 : vector<8x32xf32>
    %242 = vector.extract_strided_slice %217 {offsets = [0, 8], sizes = [8, 8], strides = [1, 1]} : vector<8x96xf32> to vector<8x8xf32>
    %243 = vector.extract_strided_slice %217 {offsets = [0, 40], sizes = [8, 8], strides = [1, 1]} : vector<8x96xf32> to vector<8x8xf32>
    %244 = vector.extract_strided_slice %217 {offsets = [0, 72], sizes = [8, 8], strides = [1, 1]} : vector<8x96xf32> to vector<8x8xf32>
    %cst_109 = arith.constant dense<0.000000e+00> : vector<8x8xf32>
    %245 = tpu.matmul %242, %243, %cst_109 {dimension_numbers = #tpu.dot_dimension_numbers<[1], [1], [0], [0], [0, 0, 1, 0], [], []>} : vector<8x8xf32>, vector<8x8xf32>, vector<8x8xf32> -> vector<8x8xf32>
    %cst_110 = arith.constant 0.353553385 : f32
    %246 = vector.broadcast %cst_110 : f32 to vector<8x8xf32>
    %247 = arith.mulf %245, %246 : vector<8x8xf32>
    %248 = vector.broadcast %31 : vector<1x8xf32> to vector<8x8xf32>
    %249 = arith.addf %247, %248 : vector<8x8xf32>
    %cst_111 = arith.constant dense<0xFF800000> : vector<8xf32>
    %250 = vector.multi_reduction <maximumf>, %249, %cst_111 [1] : vector<8x8xf32> to vector<8xf32>
    %251 = vector.shape_cast %250 : vector<8xf32> to vector<8x1xf32>
    %252 = vector.broadcast %251 : vector<8x1xf32> to vector<8x8xf32>
    %253 = arith.subf %249, %252 : vector<8x8xf32>
    %254 = math.exp %253 : vector<8x8xf32>
    %cst_112 = arith.constant dense<0.000000e+00> : vector<8xf32>
    %255 = vector.multi_reduction <add>, %254, %cst_112 [1] : vector<8x8xf32> to vector<8xf32>
    %256 = vector.shape_cast %255 : vector<8xf32> to vector<8x1xf32>
    %257 = vector.broadcast %256 : vector<8x1xf32> to vector<8x8xf32>
    %258 = arith.divf %254, %257 : vector<8x8xf32>
    %cst_113 = arith.constant dense<0.000000e+00> : vector<8x8xf32>
    %259 = tpu.matmul %258, %244, %cst_113 {dimension_numbers = #tpu.dot_dimension_numbers<[1], [0], [0], [1], [0, 0, 1, 1], [], []>} : vector<8x8xf32>, vector<8x8xf32>, vector<8x8xf32> -> vector<8x8xf32>
    %260 = vector.extract_strided_slice %219 {offsets = [8, 0], sizes = [8, 32], strides = [1, 1]} : vector<32x32xf32> to vector<8x32xf32>
    %cst_114 = arith.constant dense<0.000000e+00> : vector<8x32xf32>
    %261 = tpu.matmul %259, %260, %cst_114 {dimension_numbers = #tpu.dot_dimension_numbers<[1], [0], [0], [1], [0, 0, 1, 1], [], []>} : vector<8x8xf32>, vector<8x32xf32>, vector<8x32xf32> -> vector<8x32xf32>
    %262 = arith.addf %241, %261 : vector<8x32xf32>
    %263 = vector.extract_strided_slice %217 {offsets = [0, 16], sizes = [8, 8], strides = [1, 1]} : vector<8x96xf32> to vector<8x8xf32>
    %264 = vector.extract_strided_slice %217 {offsets = [0, 48], sizes = [8, 8], strides = [1, 1]} : vector<8x96xf32> to vector<8x8xf32>
    %265 = vector.extract_strided_slice %217 {offsets = [0, 80], sizes = [8, 8], strides = [1, 1]} : vector<8x96xf32> to vector<8x8xf32>
    %cst_115 = arith.constant dense<0.000000e+00> : vector<8x8xf32>
    %266 = tpu.matmul %263, %264, %cst_115 {dimension_numbers = #tpu.dot_dimension_numbers<[1], [1], [0], [0], [0, 0, 1, 0], [], []>} : vector<8x8xf32>, vector<8x8xf32>, vector<8x8xf32> -> vector<8x8xf32>
    %cst_116 = arith.constant 0.353553385 : f32
    %267 = vector.broadcast %cst_116 : f32 to vector<8x8xf32>
    %268 = arith.mulf %266, %267 : vector<8x8xf32>
    %269 = vector.broadcast %31 : vector<1x8xf32> to vector<8x8xf32>
    %270 = arith.addf %268, %269 : vector<8x8xf32>
    %cst_117 = arith.constant dense<0xFF800000> : vector<8xf32>
    %271 = vector.multi_reduction <maximumf>, %270, %cst_117 [1] : vector<8x8xf32> to vector<8xf32>
    %272 = vector.shape_cast %271 : vector<8xf32> to vector<8x1xf32>
    %273 = vector.broadcast %272 : vector<8x1xf32> to vector<8x8xf32>
    %274 = arith.subf %270, %273 : vector<8x8xf32>
    %275 = math.exp %274 : vector<8x8xf32>
    %cst_118 = arith.constant dense<0.000000e+00> : vector<8xf32>
    %276 = vector.multi_reduction <add>, %275, %cst_118 [1] : vector<8x8xf32> to vector<8xf32>
    %277 = vector.shape_cast %276 : vector<8xf32> to vector<8x1xf32>
    %278 = vector.broadcast %277 : vector<8x1xf32> to vector<8x8xf32>
    %279 = arith.divf %275, %278 : vector<8x8xf32>
    %cst_119 = arith.constant dense<0.000000e+00> : vector<8x8xf32>
    %280 = tpu.matmul %279, %265, %cst_119 {dimension_numbers = #tpu.dot_dimension_numbers<[1], [0], [0], [1], [0, 0, 1, 1], [], []>} : vector<8x8xf32>, vector<8x8xf32>, vector<8x8xf32> -> vector<8x8xf32>
    %281 = vector.extract_strided_slice %219 {offsets = [16, 0], sizes = [8, 32], strides = [1, 1]} : vector<32x32xf32> to vector<8x32xf32>
    %cst_120 = arith.constant dense<0.000000e+00> : vector<8x32xf32>
    %282 = tpu.matmul %280, %281, %cst_120 {dimension_numbers = #tpu.dot_dimension_numbers<[1], [0], [0], [1], [0, 0, 1, 1], [], []>} : vector<8x8xf32>, vector<8x32xf32>, vector<8x32xf32> -> vector<8x32xf32>
    %283 = arith.addf %262, %282 : vector<8x32xf32>
    %284 = vector.extract_strided_slice %217 {offsets = [0, 24], sizes = [8, 8], strides = [1, 1]} : vector<8x96xf32> to vector<8x8xf32>
    %285 = vector.extract_strided_slice %217 {offsets = [0, 56], sizes = [8, 8], strides = [1, 1]} : vector<8x96xf32> to vector<8x8xf32>
    %286 = vector.extract_strided_slice %217 {offsets = [0, 88], sizes = [8, 8], strides = [1, 1]} : vector<8x96xf32> to vector<8x8xf32>
    %cst_121 = arith.constant dense<0.000000e+00> : vector<8x8xf32>
    %287 = tpu.matmul %284, %285, %cst_121 {dimension_numbers = #tpu.dot_dimension_numbers<[1], [1], [0], [0], [0, 0, 1, 0], [], []>} : vector<8x8xf32>, vector<8x8xf32>, vector<8x8xf32> -> vector<8x8xf32>
    %cst_122 = arith.constant 0.353553385 : f32
    %288 = vector.broadcast %cst_122 : f32 to vector<8x8xf32>
    %289 = arith.mulf %287, %288 : vector<8x8xf32>
    %290 = vector.broadcast %31 : vector<1x8xf32> to vector<8x8xf32>
    %291 = arith.addf %289, %290 : vector<8x8xf32>
    %cst_123 = arith.constant dense<0xFF800000> : vector<8xf32>
    %292 = vector.multi_reduction <maximumf>, %291, %cst_123 [1] : vector<8x8xf32> to vector<8xf32>
    %293 = vector.shape_cast %292 : vector<8xf32> to vector<8x1xf32>
    %294 = vector.broadcast %293 : vector<8x1xf32> to vector<8x8xf32>
    %295 = arith.subf %291, %294 : vector<8x8xf32>
    %296 = math.exp %295 : vector<8x8xf32>
    %cst_124 = arith.constant dense<0.000000e+00> : vector<8xf32>
    %297 = vector.multi_reduction <add>, %296, %cst_124 [1] : vector<8x8xf32> to vector<8xf32>
    %298 = vector.shape_cast %297 : vector<8xf32> to vector<8x1xf32>
    %299 = vector.broadcast %298 : vector<8x1xf32> to vector<8x8xf32>
    %300 = arith.divf %296, %299 : vector<8x8xf32>
    %cst_125 = arith.constant dense<0.000000e+00> : vector<8x8xf32>
    %301 = tpu.matmul %300, %286, %cst_125 {dimension_numbers = #tpu.dot_dimension_numbers<[1], [0], [0], [1], [0, 0, 1, 1], [], []>} : vector<8x8xf32>, vector<8x8xf32>, vector<8x8xf32> -> vector<8x8xf32>
    %302 = vector.extract_strided_slice %219 {offsets = [24, 0], sizes = [8, 32], strides = [1, 1]} : vector<32x32xf32> to vector<8x32xf32>
    %cst_126 = arith.constant dense<0.000000e+00> : vector<8x32xf32>
    %303 = tpu.matmul %301, %302, %cst_126 {dimension_numbers = #tpu.dot_dimension_numbers<[1], [0], [0], [1], [0, 0, 1, 1], [], []>} : vector<8x8xf32>, vector<8x32xf32>, vector<8x32xf32> -> vector<8x32xf32>
    %304 = arith.addf %283, %303 : vector<8x32xf32>
    %c1_127 = arith.constant 1 : index
    %c0_128 = arith.constant 0 : index
    %c0_129 = arith.constant 0 : index
    %305 = vector.load %arg8[%c1_127, %c0_128, %c0_129] : memref<2x1x32xf32, #tpu.memory_space<vmem>>, vector<1x1x32xf32>
    %306 = vector.shape_cast %305 : vector<1x1x32xf32> to vector<1x32xf32>
    %307 = vector.broadcast %306 : vector<1x32xf32> to vector<8x32xf32>
    %308 = arith.addf %304, %307 : vector<8x32xf32>
    %309 = arith.addf %308, %210 : vector<8x32xf32>
    %c1_130 = arith.constant 1 : index
    %c0_131 = arith.constant 0 : index
    %c0_132 = arith.constant 0 : index
    %310 = vector.load %arg9[%c1_130, %c0_131, %c0_132] : memref<2x1x32xf32, #tpu.memory_space<vmem>>, vector<1x1x32xf32>
    %311 = vector.shape_cast %310 : vector<1x1x32xf32> to vector<1x32xf32>
    %c1_133 = arith.constant 1 : index
    %c0_134 = arith.constant 0 : index
    %c0_135 = arith.constant 0 : index
    %312 = vector.load %arg10[%c1_133, %c0_134, %c0_135] : memref<2x1x32xf32, #tpu.memory_space<vmem>>, vector<1x1x32xf32>
    %313 = vector.shape_cast %312 : vector<1x1x32xf32> to vector<1x32xf32>
    %cst_136 = arith.constant dense<0.000000e+00> : vector<8xf32>
    %314 = vector.multi_reduction <add>, %309, %cst_136 [1] : vector<8x32xf32> to vector<8xf32>
    %315 = vector.shape_cast %314 : vector<8xf32> to vector<8x1xf32>
    %cst_137 = arith.constant 3.200000e+01 : f32
    %316 = vector.broadcast %cst_137 : f32 to vector<8x1xf32>
    %317 = arith.divf %315, %316 : vector<8x1xf32>
    %318 = vector.broadcast %317 : vector<8x1xf32> to vector<8x32xf32>
    %319 = arith.subf %309, %318 : vector<8x32xf32>
    %320 = arith.mulf %319, %319 : vector<8x32xf32>
    %cst_138 = arith.constant dense<0.000000e+00> : vector<8xf32>
    %321 = vector.multi_reduction <add>, %320, %cst_138 [1] : vector<8x32xf32> to vector<8xf32>
    %322 = vector.shape_cast %321 : vector<8xf32> to vector<8x1xf32>
    %cst_139 = arith.constant 3.200000e+01 : f32
    %323 = vector.broadcast %cst_139 : f32 to vector<8x1xf32>
    %324 = arith.divf %322, %323 : vector<8x1xf32>
    %325 = vector.broadcast %317 : vector<8x1xf32> to vector<8x32xf32>
    %326 = arith.subf %309, %325 : vector<8x32xf32>
    %cst_140 = arith.constant 9.99999996E-13 : f32
    %327 = vector.broadcast %cst_140 : f32 to vector<8x1xf32>
    %328 = arith.addf %324, %327 : vector<8x1xf32>
    %329 = math.rsqrt %328 : vector<8x1xf32>
    %330 = vector.broadcast %329 : vector<8x1xf32> to vector<8x32xf32>
    %331 = arith.mulf %326, %330 : vector<8x32xf32>
    %332 = vector.broadcast %311 : vector<1x32xf32> to vector<8x32xf32>
    %333 = arith.mulf %331, %332 : vector<8x32xf32>
    %334 = vector.broadcast %313 : vector<1x32xf32> to vector<8x32xf32>
    %335 = arith.addf %333, %334 : vector<8x32xf32>
    %c1_141 = arith.constant 1 : index
    %c0_142 = arith.constant 0 : index
    %c0_143 = arith.constant 0 : index
    %336 = vector.load %arg11[%c1_141, %c0_142, %c0_143] : memref<2x32x128xf32, #tpu.memory_space<vmem>>, vector<1x32x128xf32>
    %337 = vector.shape_cast %336 : vector<1x32x128xf32> to vector<32x128xf32>
    %cst_144 = arith.constant dense<0.000000e+00> : vector<8x128xf32>
    %338 = tpu.matmul %335, %337, %cst_144 {dimension_numbers = #tpu.dot_dimension_numbers<[1], [0], [0], [1], [0, 0, 1, 1], [], []>} : vector<8x32xf32>, vector<32x128xf32>, vector<8x128xf32> -> vector<8x128xf32>
    %c1_145 = arith.constant 1 : index
    %c0_146 = arith.constant 0 : index
    %c0_147 = arith.constant 0 : index
    %339 = vector.load %arg12[%c1_145, %c0_146, %c0_147] : memref<2x1x128xf32, #tpu.memory_space<vmem>>, vector<1x1x128xf32>
    %340 = vector.shape_cast %339 : vector<1x1x128xf32> to vector<1x128xf32>
    %341 = vector.broadcast %340 : vector<1x128xf32> to vector<8x128xf32>
    %342 = arith.addf %338, %341 : vector<8x128xf32>
    %cst_148 = arith.constant 5.000000e-01 : f32
    %343 = vector.broadcast %cst_148 : f32 to vector<8x128xf32>
    %344 = arith.mulf %343, %342 : vector<8x128xf32>
    %cst_149 = arith.constant 4.471500e-02 : f32
    %345 = vector.broadcast %cst_149 : f32 to vector<8x128xf32>
    %346 = arith.mulf %345, %342 : vector<8x128xf32>
    %347 = arith.mulf %346, %342 : vector<8x128xf32>
    %348 = arith.mulf %347, %342 : vector<8x128xf32>
    %349 = arith.addf %342, %348 : vector<8x128xf32>
    %cst_150 = arith.constant 0.797884583 : f32
    %350 = vector.broadcast %cst_150 : f32 to vector<8x128xf32>
    %351 = arith.mulf %350, %349 : vector<8x128xf32>
    %352 = math.tanh %351 : vector<8x128xf32>
    %cst_151 = arith.constant 1.000000e+00 : f32
    %353 = vector.broadcast %cst_151 : f32 to vector<8x128xf32>
    %354 = arith.addf %353, %352 : vector<8x128xf32>
    %355 = arith.mulf %344, %354 : vector<8x128xf32>
    %c1_152 = arith.constant 1 : index
    %c0_153 = arith.constant 0 : index
    %c0_154 = arith.constant 0 : index
    %356 = vector.load %arg13[%c1_152, %c0_153, %c0_154] : memref<2x128x32xf32, #tpu.memory_space<vmem>>, vector<1x128x32xf32>
    %357 = vector.shape_cast %356 : vector<1x128x32xf32> to vector<128x32xf32>
    %cst_155 = arith.constant dense<0.000000e+00> : vector<8x32xf32>
    %358 = tpu.matmul %355, %357, %cst_155 {dimension_numbers = #tpu.dot_dimension_numbers<[1], [0], [0], [1], [0, 0, 1, 1], [], []>} : vector<8x128xf32>, vector<128x32xf32>, vector<8x32xf32> -> vector<8x32xf32>
    %c1_156 = arith.constant 1 : index
    %c0_157 = arith.constant 0 : index
    %c0_158 = arith.constant 0 : index
    %359 = vector.load %arg14[%c1_156, %c0_157, %c0_158] : memref<2x1x32xf32, #tpu.memory_space<vmem>>, vector<1x1x32xf32>
    %360 = vector.shape_cast %359 : vector<1x1x32xf32> to vector<1x32xf32>
    %361 = vector.broadcast %360 : vector<1x32xf32> to vector<8x32xf32>
    %362 = arith.addf %358, %361 : vector<8x32xf32>
    %363 = arith.addf %362, %335 : vector<8x32xf32>
    %c1_159 = arith.constant 1 : index
    %c0_160 = arith.constant 0 : index
    %c0_161 = arith.constant 0 : index
    %364 = vector.load %arg15[%c1_159, %c0_160, %c0_161] : memref<2x1x32xf32, #tpu.memory_space<vmem>>, vector<1x1x32xf32>
    %365 = vector.shape_cast %364 : vector<1x1x32xf32> to vector<1x32xf32>
    %c1_162 = arith.constant 1 : index
    %c0_163 = arith.constant 0 : index
    %c0_164 = arith.constant 0 : index
    %366 = vector.load %arg16[%c1_162, %c0_163, %c0_164] : memref<2x1x32xf32, #tpu.memory_space<vmem>>, vector<1x1x32xf32>
    %367 = vector.shape_cast %366 : vector<1x1x32xf32> to vector<1x32xf32>
    %cst_165 = arith.constant dense<0.000000e+00> : vector<8xf32>
    %368 = vector.multi_reduction <add>, %363, %cst_165 [1] : vector<8x32xf32> to vector<8xf32>
    %369 = vector.shape_cast %368 : vector<8xf32> to vector<8x1xf32>
    %cst_166 = arith.constant 3.200000e+01 : f32
    %370 = vector.broadcast %cst_166 : f32 to vector<8x1xf32>
    %371 = arith.divf %369, %370 : vector<8x1xf32>
    %372 = vector.broadcast %371 : vector<8x1xf32> to vector<8x32xf32>
    %373 = arith.subf %363, %372 : vector<8x32xf32>
    %374 = arith.mulf %373, %373 : vector<8x32xf32>
    %cst_167 = arith.constant dense<0.000000e+00> : vector<8xf32>
    %375 = vector.multi_reduction <add>, %374, %cst_167 [1] : vector<8x32xf32> to vector<8xf32>
    %376 = vector.shape_cast %375 : vector<8xf32> to vector<8x1xf32>
    %cst_168 = arith.constant 3.200000e+01 : f32
    %377 = vector.broadcast %cst_168 : f32 to vector<8x1xf32>
    %378 = arith.divf %376, %377 : vector<8x1xf32>
    %379 = vector.broadcast %371 : vector<8x1xf32> to vector<8x32xf32>
    %380 = arith.subf %363, %379 : vector<8x32xf32>
    %cst_169 = arith.constant 9.99999996E-13 : f32
    %381 = vector.broadcast %cst_169 : f32 to vector<8x1xf32>
    %382 = arith.addf %378, %381 : vector<8x1xf32>
    %383 = math.rsqrt %382 : vector<8x1xf32>
    %384 = vector.broadcast %383 : vector<8x1xf32> to vector<8x32xf32>
    %385 = arith.mulf %380, %384 : vector<8x32xf32>
    %386 = vector.broadcast %365 : vector<1x32xf32> to vector<8x32xf32>
    %387 = arith.mulf %385, %386 : vector<8x32xf32>
    %388 = vector.broadcast %367 : vector<1x32xf32> to vector<8x32xf32>
    %389 = arith.addf %387, %388 : vector<8x32xf32>
    %390 = vector.extract_strided_slice %389 {offsets = [0, 0], sizes = [1, 32], strides = [1, 1]} : vector<8x32xf32> to vector<1x32xf32>
    %c0_170 = arith.constant 0 : index
    %c0_171 = arith.constant 0 : index
    %391 = vector.load %arg17[%c0_170, %c0_171] : memref<32x32xf32, #tpu.memory_space<vmem>>, vector<32x32xf32>
    %cst_172 = arith.constant dense<0.000000e+00> : vector<1x32xf32>
    %392 = tpu.matmul %390, %391, %cst_172 {dimension_numbers = #tpu.dot_dimension_numbers<[1], [0], [0], [1], [0, 0, 1, 1], [], []>} : vector<1x32xf32>, vector<32x32xf32>, vector<1x32xf32> -> vector<1x32xf32>
    %c0_173 = arith.constant 0 : index
    %c0_174 = arith.constant 0 : index
    %393 = vector.load %arg18[%c0_173, %c0_174] : memref<1x32xf32, #tpu.memory_space<vmem>>, vector<1x32xf32>
    %394 = arith.addf %392, %393 : vector<1x32xf32>
    %395 = math.tanh %394 : vector<1x32xf32>
    %c0_175 = arith.constant 0 : index
    %c0_176 = arith.constant 0 : index
    %396 = vector.load %arg19[%c0_175, %c0_176] : memref<32x5xf32, #tpu.memory_space<vmem>>, vector<32x5xf32>
    %cst_177 = arith.constant dense<0.000000e+00> : vector<1x5xf32>
    %397 = tpu.matmul %395, %396, %cst_177 {dimension_numbers = #tpu.dot_dimension_numbers<[1], [0], [0], [1], [0, 0, 1, 1], [], []>} : vector<1x32xf32>, vector<32x5xf32>, vector<1x5xf32> -> vector<1x5xf32>
    %c0_178 = arith.constant 0 : index
    %c0_179 = arith.constant 0 : index
    %398 = vector.load %arg20[%c0_178, %c0_179] : memref<1x5xf32, #tpu.memory_space<vmem>>, vector<1x5xf32>
    %399 = arith.addf %397, %398 : vector<1x5xf32>
    %c0_180 = arith.constant 0 : index
    %c0_181 = arith.constant 0 : index
    %c0_182 = arith.constant 0 : index
    %400 = vector.load %arg21[%c0_180, %c0_181, %c0_182] : memref<1x1x5xf32, #tpu.memory_space<vmem>>, vector<1x1x5xf32>
    %401 = vector.shape_cast %400 : vector<1x1x5xf32> to vector<1x5xf32>
    %402 = vector.shape_cast %399 : vector<1x5xf32> to vector<1x1x5xf32>
    tpu.vector_store %arg21[%c0_180, %c0_181, %c0_182], %402 {strides = array<i32>} : memref<1x1x5xf32, #tpu.memory_space<vmem>>, vector<1x1x5xf32>,
    return
  }
  func.func @transform_0(%arg0: i32) -> (i32, i32, i32) {
    %c0_i32 = arith.constant 0 : i32
    %c0_i32_0 = arith.constant 0 : i32
    %c0_i32_1 = arith.constant 0 : i32
    return %arg0, %c0_i32, %c0_i32_0 : i32, i32, i32
  }
  func.func @transform_1(%arg0: i32) -> (i32, i32, i32) {
    %c0_i32 = arith.constant 0 : i32
    %c0_i32_0 = arith.constant 0 : i32
    %c0_i32_1 = arith.constant 0 : i32
    return %arg0, %c0_i32, %c0_i32_0 : i32, i32, i32
  }
  func.func @transform_2(%arg0: i32) -> (i32, i32) {
    %c0_i32 = arith.constant 0 : i32
    %c0_i32_0 = arith.constant 0 : i32
    %c0_i32_1 = arith.constant 0 : i32
    return %c0_i32, %c0_i32_0 : i32, i32
  }
  func.func @transform_3(%arg0: i32) -> (i32, i32) {
    %c0_i32 = arith.constant 0 : i32
    %c0_i32_0 = arith.constant 0 : i32
    %c0_i32_1 = arith.constant 0 : i32
    return %c0_i32, %c0_i32_0 : i32, i32
  }
  func.func @transform_4(%arg0: i32) -> (i32, i32, i32) {
    %c0_i32 = arith.constant 0 : i32
    %c0_i32_0 = arith.constant 0 : i32
    %c0_i32_1 = arith.constant 0 : i32
    %c0_i32_2 = arith.constant 0 : i32
    return %c0_i32, %c0_i32_0, %c0_i32_1 : i32, i32, i32
  }
  func.func @transform_5(%arg0: i32) -> (i32, i32, i32) {
    %c0_i32 = arith.constant 0 : i32
    %c0_i32_0 = arith.constant 0 : i32
    %c0_i32_1 = arith.constant 0 : i32
    %c0_i32_2 = arith.constant 0 : i32
    return %c0_i32, %c0_i32_0, %c0_i32_1 : i32, i32, i32
  }
  func.func @transform_6(%arg0: i32) -> (i32, i32, i32) {
    %c0_i32 = arith.constant 0 : i32
    %c0_i32_0 = arith.constant 0 : i32
    %c0_i32_1 = arith.constant 0 : i32
    %c0_i32_2 = arith.constant 0 : i32
    return %c0_i32, %c0_i32_0, %c0_i32_1 : i32, i32, i32
  }
  func.func @transform_7(%arg0: i32) -> (i32, i32, i32) {
    %c0_i32 = arith.constant 0 : i32
    %c0_i32_0 = arith.constant 0 : i32
    %c0_i32_1 = arith.constant 0 : i32
    %c0_i32_2 = arith.constant 0 : i32
    return %c0_i32, %c0_i32_0, %c0_i32_1 : i32, i32, i32
  }
  func.func @transform_8(%arg0: i32) -> (i32, i32, i32) {
    %c0_i32 = arith.constant 0 : i32
    %c0_i32_0 = arith.constant 0 : i32
    %c0_i32_1 = arith.constant 0 : i32
    %c0_i32_2 = arith.constant 0 : i32
    return %c0_i32, %c0_i32_0, %c0_i32_1 : i32, i32, i32
  }
  func.func @transform_9(%arg0: i32) -> (i32, i32, i32) {
    %c0_i32 = arith.constant 0 : i32
    %c0_i32_0 = arith.constant 0 : i32
    %c0_i32_1 = arith.constant 0 : i32
    %c0_i32_2 = arith.constant 0 : i32
    return %c0_i32, %c0_i32_0, %c0_i32_1 : i32, i32, i32
  }
  func.func @transform_10(%arg0: i32) -> (i32, i32, i32) {
    %c0_i32 = arith.constant 0 : i32
    %c0_i32_0 = arith.constant 0 : i32
    %c0_i32_1 = arith.constant 0 : i32
    %c0_i32_2 = arith.constant 0 : i32
    return %c0_i32, %c0_i32_0, %c0_i32_1 : i32, i32, i32
  }
  func.func @transform_11(%arg0: i32) -> (i32, i32, i32) {
    %c0_i32 = arith.constant 0 : i32
    %c0_i32_0 = arith.constant 0 : i32
    %c0_i32_1 = arith.constant 0 : i32
    %c0_i32_2 = arith.constant 0 : i32
    return %c0_i32, %c0_i32_0, %c0_i32_1 : i32, i32, i32
  }
  func.func @transform_12(%arg0: i32) -> (i32, i32, i32) {
    %c0_i32 = arith.constant 0 : i32
    %c0_i32_0 = arith.constant 0 : i32
    %c0_i32_1 = arith.constant 0 : i32
    %c0_i32_2 = arith.constant 0 : i32
    return %c0_i32, %c0_i32_0, %c0_i32_1 : i32, i32, i32
  }
  func.func @transform_13(%arg0: i32) -> (i32, i32, i32) {
    %c0_i32 = arith.constant 0 : i32
    %c0_i32_0 = arith.constant 0 : i32
    %c0_i32_1 = arith.constant 0 : i32
    %c0_i32_2 = arith.constant 0 : i32
    return %c0_i32, %c0_i32_0, %c0_i32_1 : i32, i32, i32
  }
  func.func @transform_14(%arg0: i32) -> (i32, i32, i32) {
    %c0_i32 = arith.constant 0 : i32
    %c0_i32_0 = arith.constant 0 : i32
    %c0_i32_1 = arith.constant 0 : i32
    %c0_i32_2 = arith.constant 0 : i32
    return %c0_i32, %c0_i32_0, %c0_i32_1 : i32, i32, i32
  }
  func.func @transform_15(%arg0: i32) -> (i32, i32, i32) {
    %c0_i32 = arith.constant 0 : i32
    %c0_i32_0 = arith.constant 0 : i32
    %c0_i32_1 = arith.constant 0 : i32
    %c0_i32_2 = arith.constant 0 : i32
    return %c0_i32, %c0_i32_0, %c0_i32_1 : i32, i32, i32
  }
  func.func @transform_16(%arg0: i32) -> (i32, i32) {
    %c0_i32 = arith.constant 0 : i32
    %c0_i32_0 = arith.constant 0 : i32
    %c0_i32_1 = arith.constant 0 : i32
    return %c0_i32, %c0_i32_0 : i32, i32
  }
  func.func @transform_17(%arg0: i32) -> (i32, i32) {
    %c0_i32 = arith.constant 0 : i32
    %c0_i32_0 = arith.constant 0 : i32
    %c0_i32_1 = arith.constant 0 : i32
    return %c0_i32, %c0_i32_0 : i32, i32
  }
  func.func @transform_18(%arg0: i32) -> (i32, i32) {
    %c0_i32 = arith.constant 0 : i32
    %c0_i32_0 = arith.constant 0 : i32
    %c0_i32_1 = arith.constant 0 : i32
    return %c0_i32, %c0_i32_0 : i32, i32
  }
  func.func @transform_19(%arg0: i32) -> (i32, i32) {
    %c0_i32 = arith.constant 0 : i32
    %c0_i32_0 = arith.constant 0 : i32
    %c0_i32_1 = arith.constant 0 : i32
    return %c0_i32, %c0_i32_0 : i32, i32
  }
  func.func @transform_20(%arg0: i32) -> (i32, i32, i32) {
    %c0_i32 = arith.constant 0 : i32
    %c0_i32_0 = arith.constant 0 : i32
    %c0_i32_1 = arith.constant 0 : i32
    return %arg0, %c0_i32, %c0_i32_0 : i32, i32, i32
  }
}

</mosaic_0001>

<bundles_post_ra>
// kernel: forward.1
= control target key start
LH: loop header
LB: loop body
LE: loop exit
PB: predicated region body
PF: predicated region fallthrough
CT: control target
= control target key end

     0   :  { %s4739_s0 = inlined_call_operand.vmem [shape: f32[2,8,32], index: 0, kind: input, shape index: {}]   ;;  %s4740_s1 = inlined_call_operand.vmem [shape: f32[2,1,8], index: 1, kind: input, shape index: {}]   ;;  %s4741_s2 = inlined_call_operand.vmem [shape: f32[1,32], index: 2, kind: input, shape index: {}]   ;;  %s4742_s3 = inlined_call_operand.vmem [shape: f32[1,32], index: 3, kind: input, shape index: {}]   ;;  %s4743_s4 = inlined_call_operand.vmem [shape: f32[2,32,96], index: 4, kind: input, shape index: {}]   ;;  %s4744_s5 = inlined_call_operand.vmem [shape: f32[2,1,96], index: 5, kind: input, shape index: {}]   ;;  %s4745_s6 = inlined_call_operand.vmem [shape: f32[2,32,32], index: 6, kind: input, shape index: {}]   ;;  %s4746_s7 = inlined_call_operand.vmem [shape: f32[2,1,32], index: 7, kind: input, shape index: {}]   ;;  %s4747_s8 = inlined_call_operand.vmem [shape: f32[2,1,32], index: 8, kind: input, shape index: {}]   ;;  %s4748_s9 = inlined_call_operand.vmem [shape: f32[2,1,32], index: 9, kind: input, shape index: {}]   ;;  %s4749_s10 = inlined_call_operand.vmem [shape: f32[2,32,128], index: 10, kind: input, shape index: {}]   ;;  %s4750_s11 = inlined_call_operand.vmem [shape: f32[2,1,128], index: 11, kind: input, shape index: {}]   ;;  %s4751_s12 = inlined_call_operand.vmem [shape: f32[2,128,32], index: 12, kind: input, shape index: {}]   ;;  %s4752_s13 = inlined_call_operand.vmem [shape: f32[2,1,32], index: 13, kind: input, shape index: {}]   ;;  %s4753_s14 = inlined_call_operand.vmem [shape: f32[2,1,32], index: 14, kind: input, shape index: {}]   ;;  %s4754_s15 = inlined_call_operand.vmem [shape: f32[2,1,32], index: 15, kind: input, shape index: {}]   ;;  %s4755_s16 = inlined_call_operand.vmem [shape: f32[32,32], index: 16, kind: input, shape index: {}]   ;;  %s4756_s17 = inlined_call_operand.vmem [shape: f32[1,32], index: 17, kind: input, shape index: {}]   ;;  %s4757_s18 = inlined_call_operand.vmem [shape: f32[32,5], index: 18, kind: input, shape index: {}]   ;;  %s4758_s19 = inlined_call_operand.vmem [shape: f32[1,5], index: 19, kind: input, shape index: {}]   ;;  %s4759_s20 = inlined_call_operand.vmem [shape: f32[2,1,5], index: 20, kind: output, shape index: {}]  }
   0x1   :  { %4768 = sst [smem:[#allocation2_spill]] %s4739_s0 }
   0x2   :  { %4769 = sst [smem:[#allocation3_spill]] %s4740_s1  ;;  %s4175_s1 = smov 0  }
   0x3   :  { %4770 = sst [smem:[#allocation4_spill]] %s4741_s2 }
   0x4   :  { %4771 = sst [smem:[#allocation5_spill]] %s4742_s3 }
   0x5   :  { %4772 = sst [smem:[#allocation6_spill]] %s4743_s4 }
   0x6 LB: > { %s3512_s22 = sadd.s32 4294967295, %s4055_s1   ;;  %p3516_p0 = scmp.ge.s32.totalorder %s4055_s1, 1  ;;  %s4055_s1 = sphi %s4175_s1, %s30_s1  }
   0x7   : > { %p569_p1 = scmp.lt.s32.totalorder %s4055_s1, 3 }
   0x9   : > { %p570_p2 = pnand %p3516_p0, %p569_p1 }
   0xa   : > { %p627_p3 = scmp.lt.s32.totalorder (!%p570_p2), %s3512_s22, 1  ;;  %s4773_s25 = sld [smem:[#allocation2_spill]] (!%p570_p2) }
   0xb   : > { %573 = sbr.rel (%p570_p2) target bundleno = 8188 (0x1ffc), region = 100  ;;  %s4774_s28 = sld [smem:[#allocation6_spill]] (!%p570_p2) }
   0xc   : > { %s4776_s27 = sld [smem:[#allocation5_spill]] (!%p570_p2)  ;;  %s4059_s30 = smov (!%p570_p2), 120  }
   0xd   : > { %s4060_s0 = smov (!%p570_p2), 96   ;;  %s4061_s21 = smov (!%p570_p2), 88  }
   0xe   : > { %s4777_s2 = sld [smem:[#allocation3_spill]] (!%p570_p2)  ;;  %s4063_s26 = smov (!%p570_p2), 64  }
   0xf   : > { %s4766_s4 = smov (!%p570_p2), 112   ;;  %s4763_s29 = smov (!%p570_p2), 104  }
  0x10   : > { %s4786_s22 = smov (!%p627_p3, %s3512_s22), 1  ;;  %vm640_vm0 = vcmask 261120   ;;  %v4057_v8 = vmov 0.0   ;;  %vm4058_vm1 = vmmov 0   ;;  %v3520_v21 = vld [vmem:[%s4744_s5] ss:$0 sm:$0xff]  ;;  %v840_v28 = vlaneseq }
  0x11   : > { %s3517_s23 = sshll.u32 %s4786_s22, 3  ;;  %v675_v7 = vld [vmem:[%s4774_s28 + $0x18] sm:$0xff]  ;;  %3724 = vmatprep.subr.mxu0 %v4057_v8  ;;  %v674_v9 = vld [vmem:[%s4774_s28 + $0x10] sm:$0xff]  ;;  %3732 = vmatprep.mubr.msk.f32.mxu0 %vm4058_vm1, %v4057_v8  ;;  %v673_v10 = vld [vmem:[%s4774_s28 + $0x8] sm:$0xff]  ;;  %vm763_vm2 = vcmask 64512   ;;  %s4762_s24 = smov 40  }
  0x12   : > { %s630_s3 = scalar_lea.vmem %s4773_s25, %s3517_s23  ;;  %3725 = vmatpush3.msra.mxu0 %v675_v7  ;;  %3740 = vmatprep.subr.mxu1 %v4057_v8  ;;  %v672_v11 = vld [vmem:[%s4774_s28] sm:$0xff]  ;;  %s4775_s25 = sld [smem:[#allocation4_spill]]  ;;  %v841_v31 = vshrl.u32 %v840_v28, 7  ;;  %vm3454_vm3 = vcmask 32768  }
  0x13   : > { %v637_v0 = vld [vmem:[%s630_s3] sm:$0xff]  ;;  %3726 = vmatprep.subr.mxu0 %v4057_v8  ;;  %3742 = vmatprep.mubr.msk.f32.mxu1 %vm4058_vm1, %v4057_v8  ;;  %s4767_s3 = smov 56   ;;  %s4761_s23 = smov 72  }
  0x14   : > { %v641_v1 = vsel %vm640_vm0, %v637_v0, 0.0  ;;  %3727 = vmatpush3.msra.mxu0 %v674_v9  ;;  %v3519_v18 = vld [vmem:[%s4776_s27] ss:$0 sm:$0xff]  ;;  %v842_v33 = vsub.s32 0, %v841_v31  ;;  %s4765_s27 = smov 80   ;;  %v758_v31 = vld [vmem:[%s4745_s6 + $0x10] sm:$0xff] }
  0x15   : > { %642 = vadd.xlane.f32.xlu0 %v641_v1  ;;  %3728 = vmatprep.subr.mxu0 %v4057_v8  ;;  %v756_v63 = vld [vmem:[%s4745_s6] sm:$0xff] }
  0x16   : > { %3729 = vmatpush3.msra.mxu0 %v673_v10 }
  0x17   : > { %3730 = vmatprep.subr.mxu0 %v4057_v8 }
  0x18   : > { %3731 = vmatpush3.msra.mxu0 %v672_v11  ;;  %v3518_v16 = vld [vmem:[%s4775_s25] ss:$0 sm:$0xff]  ;;  %s633_s25 = scalar_lea.vmem %s4777_s2, %s4786_s22 }
  0x19   : > { %3735 = vmatprep.subr.mxu0 %v4057_v8  ;;  %v669_v29 = vld [vmem:[%s633_s25] sm:$0x1]  ;;  %s4764_s25 = smov 48  }
  0x1a   : > { %v670_v30 = vsub.f32 1.0, %v669_v29 }
  0x1c   : > { %v671_v32 = vmul.f32 -1e+09, %v670_v30 }
  0x1e   : > { %v4251_v34 = vrot.slane %v671_v32, %v842_v33 }
  0x9e   : > { %v643_v2 = vpop.xlane.xlu0 %642 }
  0x9f   : > { %v645_v3 = vmul.f32 0.03125, %v643_v2 }
  0xa1   : > { %v646_v4 = vsub.f32 %v637_v0, %v645_v3  ;;  %v757_v0 = vld [vmem:[%s4745_s6 + $0x8] sm:$0xff] }
  0xa3   : > { %v647_v5 = vmul.f32 %v646_v4, %v646_v4 }
  0xa5   : > { %v648_v6 = vsel %vm640_vm0, %v647_v5, 0.0 }
  0xa6   : > { %649 = vadd.xlane.f32.xlu0 %v648_v6 }
 0x12f   : > { %v650_v12 = vpop.xlane.xlu0 %649 }
 0x130   : > { %v651_v13 = vmul.f32 0.03125, %v650_v12 }
 0x132   : > { %v652_v14 = vadd.f32 1e-12, %v651_v13 }
 0x134   : > { %4001 = vrsqrt.f32 %v652_v14 }
 0x141   : > { %v4002_v15 = vpop.eup %4001 }
 0x142   : > { %v654_v17 = vmul.f32 %v4002_v15, %v646_v4 }
 0x144   : > { %v661_v19 = vmul.f32 %v3518_v16, %v654_v17 }
 0x146   : > { %v4219_v20 = vadd.f32 %v3519_v18, %v661_v19 }
 0x148   : > { %3733 = vmatmul.mubr.msk.f32.vlgmr.msra.gmra.mxu0 %vm640_vm0, %v4219_v20 }
 0x149   : > { %3737 = vmatprep.mubr.msk.f32.mxu0 %vm4058_vm1, %v4057_v8 }
 0x208   : > { %v752_v22 = vpop.f32.mrf.mxu0 }
 0x209   : > { %v4228_v23 = vadd.f32 %v3520_v21, %v752_v22 }
 0x20a   : > { %v3734_v24 = vpop.f32.mrf.mxu0 }
 0x20b   : > { %933 = vrot.lane.b32.xlu0 %v4228_v23, %s4059_s30  ;;  %761 = vrot.lane.b32.xlu1 %v4228_v23, %s4060_s0 }
 0x20f   : > { %935 = vrot.lane.b32.xlu1 %v4228_v23, %s4061_s21 }
 0x27d   : > { %v762_v25 = vpop.permute.xlu1 %761  ;;  %v934_v27 = vpop.permute.xlu0 %933 }
 0x27e   : > { %3736 = vmatpush3.xpose.msk.msra.mxu0 %vm763_vm2, %v762_v25 }
 0x27f   : > { %3745 = vmatprep.subr.mxu0 %v4057_v8 }
 0x281   : > { %3738 = vmatmul.mubr.msk.f32.vlgmr.msra.gmra.mxu0 %vm763_vm2, %v4228_v23  ;;  %v936_v26 = vpop.permute.xlu1 %935 }
 0x282   : > { %3746 = vmatpush3.xpose.msk.msra.mxu0 %vm763_vm2, %v936_v26  ;;  %3747 = vmatprep.mubr.msk.f32.mxu0 %vm4058_vm1, %v4057_v8 }
 0x283   : > { %3755 = vmatprep.subr.mxu0 %v4057_v8 }
 0x285   : > { %3748 = vmatmul.mubr.msk.f32.vlgmr.msra.gmra.mxu0 %vm763_vm2, %v934_v27 }
 0x286   : > { %3757 = vmatprep.mubr.msk.f32.mxu0 %vm4058_vm1, %v4057_v8  ;;  %3756 = vmatpush3.msra.mxu0 %v757_v0 }
 0x287   : > { %3765 = vmatprep.subr.mxu0 %v4057_v8 }
 0x341   : > { %v834_v35 = vpop.f32.mrf.mxu0 }
 0x342   : > { %v838_v36 = vmul.f32 0.35355338, %v834_v35 }
 0x343   : > { %v3739_v37 = vpop.f32.mrf.mxu0 }
 0x344   : > { %v845_v38 = vadd.f32 %v4251_v34, %v838_v36 }
 0x345   : > { %v1007_v39 = vpop.f32.mrf.mxu0 }
 0x346   : > { %v1011_v40 = vmul.f32 0.35355338, %v1007_v39  ;;  %v846_v41 = vsel %vm763_vm2, %v845_v38, -inf }
 0x347   : > { %847 = vmax.xlane.f32.xlu1 %v846_v41  ;;  %v3749_v42 = vpop.f32.mrf.mxu0 }
 0x348   : > { %v1012_v43 = vadd.f32 %v1011_v40, %v4251_v34 }
 0x34a   : > { %v1013_v44 = vsel %vm763_vm2, %v1012_v43, -inf }
 0x34b   : > { %1014 = vmax.xlane.f32.xlu0 %v1013_v44 }
 0x361   : > { %1024 = vrot.lane.b32.xlu0 %v4228_v23, %s4767_s3 }
 0x3d0   : > { %v848_v45 = vpop.xlane.xlu1 %847 }
 0x3d1   : > { %v849_v46 = vsub.f32 %v845_v38, %v848_v45 }
 0x3d3   : > { %v850_v47 = vmul.f32 1.442695, %v849_v46  ;;  %v759_v46 = vld [vmem:[%s4745_s6 + $0x18] sm:$0xff] }
 0x3d4   : > { %v1015_v48 = vpop.xlane.xlu0 %1014 }
 0x3d5   : > { %4003 = vpow2.f32 %v850_v47  ;;  %v1016_v49 = vsub.f32 %v1012_v43, %v1015_v48 }
 0x3d7   : > { %v1017_v50 = vmul.f32 1.442695, %v1016_v49 }
 0x3d8   : > { %v1025_v60 = vpop.permute.xlu0 %1024 }
 0x3d9   : > { %4005 = vpow2.f32 %v1017_v50 }
 0x3e2   : > { %v4004_v51 = vpop.eup %4003 }
 0x3e3   : > { %v852_v52 = vsel %vm763_vm2, %v4004_v51, 0.0 }
 0x3e4   : > { %853 = vadd.xlane.f32.xlu1 %v852_v52 }
 0x3e6   : > { %v4006_v53 = vpop.eup %4005 }
 0x3e7   : > { %v1019_v54 = vsel %vm763_vm2, %v4006_v53, 0.0 }
 0x3e8   : > { %1020 = vadd.xlane.f32.xlu1 %v1019_v54 }
 0x3f9   : > { %857 = vrot.lane.b32.xlu1 %v4228_v23, %s4063_s26 }
 0x3fd   : > { %1248 = vrot.lane.b32.xlu1 %v4228_v23, %s4765_s27 }
 0x401   : > { %1246 = vrot.lane.b32.xlu1 %v4228_v23, %s4766_s4 }
 0x46d   : > { %v854_v55 = vpop.xlane.xlu1 %853 }
 0x46e   : > { %4007 = vrcp.f32 %v854_v55  ;;  %v3538_v55 = vld [vmem:[%s4746_s7] ss:$0 sm:$0xff] }
 0x471   : > { %v1021_v56 = vpop.xlane.xlu1 %1020 }
 0x472   : > { %4009 = vrcp.f32 %v1021_v56 }
 0x475   : > { %v858_v57 = vpop.permute.xlu1 %857 }
 0x476   : > { %3741 = vmatpush3.msra.mxu1 %v858_v57 }
 0x477   : > { %3750 = vmatprep.subr.mxu1 %v4057_v8 }
 0x479   : > { %v1249_v2 = vpop.permute.xlu1 %1248 }
 0x47b   : > { %v4008_v58 = vpop.eup %4007 }
 0x47c   : > { %v856_v59 = vmul.f32 %v4008_v58, %v4004_v51 }
 0x47d   : > { %v1247_v6 = vpop.permute.xlu1 %1246 }
 0x47e   : > { %3743 = vmatmul.mubr.msk.f32.vlgmr.msra.gmra.mxu1 %vm763_vm2, %v856_v59 }
 0x47f   : > { %v4010_v61 = vpop.eup %4009  ;;  %3751 = vmatpush3.msra.mxu1 %v1025_v60  ;;  %3752 = vmatprep.mubr.msk.f32.mxu1 %vm4058_vm1, %v4057_v8 }
 0x480   : > { %v1023_v62 = vmul.f32 %v4010_v61, %v4006_v53  ;;  %3760 = vmatprep.subr.mxu1 %v4057_v8 }
 0x482   : > { %3753 = vmatmul.mubr.msk.f32.vlgmr.msra.gmra.mxu1 %vm763_vm2, %v1023_v62 }
 0x483   : > { %3762 = vmatprep.mubr.msk.f32.mxu1 %vm4058_vm1, %v4057_v8  ;;  %3761 = vmatpush3.msra.mxu1 %v756_v63 }
 0x484   : > { %3770 = vmatprep.subr.mxu1 %v4057_v8 }
 0x53e   : > { %v929_v1 = vpop.f32.mrf.mxu1 }
 0x53f   : > { %3763 = vmatmul.mubr.msk.f32.vlgmr.msra.gmra.mxu1 %vm763_vm2, %v929_v1 }
 0x540   : > { %v3744_v3 = vpop.f32.mrf.mxu1  ;;  %3772 = vmatprep.mubr.msk.f32.mxu1 %vm4058_vm1, %v4057_v8 }
 0x541   : > { %v1768_v3 = vld [vmem:[%s4749_s10 + $0x10] sm:$0xff] }
 0x542   : > { %v1096_v4 = vpop.f32.mrf.mxu1 }
 0x543   : > { %3758 = vmatmul.mubr.msk.f32.vlgmr.msra.gmra.mxu0 %vm763_vm2, %v1096_v4  ;;  %v1766_v4 = vld [vmem:[%s4749_s10] sm:$0xff] }
 0x544   : > { %3766 = vmatpush3.xpose.msk.msra.mxu0 %vm763_vm2, %v1249_v2  ;;  %v3754_v5 = vpop.f32.mrf.mxu1  ;;  %3767 = vmatprep.mubr.msk.f32.mxu0 %vm4058_vm1, %v4057_v8  ;;  %v1769_v2 = vld [vmem:[%s4749_s10 + $0x18] sm:$0xff] }
 0x545   : > { %3775 = vmatprep.subr.mxu0 %v4057_v8 }
 0x547   : > { %3768 = vmatmul.mubr.msk.f32.vlgmr.msra.gmra.mxu0 %vm763_vm2, %v1247_v6 }
 0x548   : > { %3777 = vmatprep.mubr.msk.f32.mxu0 %vm4058_vm1, %v4057_v8  ;;  %3776 = vmatpush3.msra.mxu0 %v758_v31  ;;  %v1860_v31 = vld [vmem:[%s4751_s12 + $0x8] sm:$0xff] }
 0x549   : > { %3785 = vmatprep.subr.mxu0 %v4057_v8 }
 0x5ff   : > { %v1242_v7 = vpop.f32.mrf.mxu1 }
 0x601   : > { %v3764_v9 = vpop.f32.mrf.mxu1 }
 0x603   : > { %v1169_v10 = vpop.f32.mrf.mxu0 }
 0x604   : > { %v1243_v11 = vadd.f32 %v1242_v7, %v1169_v10  ;;  %v3539_v10 = vld [vmem:[%s4747_s8] ss:$0 sm:$0xff] }
 0x605   : > { %v3759_v12 = vpop.f32.mrf.mxu0 }
 0x606   : > { %v3540_v12 = vld [vmem:[%s4748_s9] ss:$0 sm:$0xff] }
 0x607   : > { %v1320_v13 = vpop.f32.mrf.mxu0 }
 0x608   : > { %v1324_v14 = vmul.f32 0.35355338, %v1320_v13 }
 0x609   : > { %v3769_v15 = vpop.f32.mrf.mxu0 }
 0x60a   : > { %v1325_v16 = vadd.f32 %v1324_v14, %v4251_v34  ;;  %v1874_v15 = vld [vmem:[%s4751_s12 + $0x78] sm:$0xff] }
 0x60c   : > { %v1326_v17 = vsel %vm763_vm2, %v1325_v16, -inf }
 0x60d   : > { %1327 = vmax.xlane.f32.xlu1 %v1326_v17  ;;  %v1872_v17 = vld [vmem:[%s4751_s12 + $0x68] sm:$0xff] }
 0x61e   : > { %1337 = vrot.lane.b32.xlu1 %v4228_v23, %s4764_s25  ;;  %s4781_s25 = smov 48  }
 0x622   : > { %1487 = vrot.lane.b32.xlu1 %v4228_v23, %s4763_s29  ;;  %s4782_s29 = smov 104  }
 0x696   : > { %v1328_v18 = vpop.xlane.xlu1 %1327 }
 0x697   : > { %v1329_v19 = vsub.f32 %v1325_v16, %v1328_v18  ;;  %v1873_v16 = vld [vmem:[%s4751_s12 + $0x70] sm:$0xff]  ;;  %v1871_v18 = vld [vmem:[%s4751_s12 + $0x60] sm:$0xff] }
 0x699   : > { %v1330_v21 = vmul.f32 1.442695, %v1329_v19  ;;  %v1870_v19 = vld [vmem:[%s4751_s12 + $0x58] sm:$0xff] }
 0x69a   : > { %v1338_v22 = vpop.permute.xlu1 %1337 }
 0x69b   : > { %4011 = vpow2.f32 %v1330_v21  ;;  %3771 = vmatpush3.msra.mxu1 %v1338_v22  ;;  %v1869_v21 = vld [vmem:[%s4751_s12 + $0x50] sm:$0xff]  ;;  %v1868_v22 = vld [vmem:[%s4751_s12 + $0x48] sm:$0xff] }
 0x69c   : > { %3780 = vmatprep.subr.mxu1 %v4057_v8 }
 0x69e   : > { %v1488_v30 = vpop.permute.xlu1 %1487 }
 0x6a8   : > { %v4012_v24 = vpop.eup %4011 }
 0x6a9   : > { %v1332_v25 = vsel %vm763_vm2, %v4012_v24, 0.0 }
 0x6aa   : > { %1333 = vadd.xlane.f32.xlu0 %v1332_v25  ;;  %v1866_v25 = vld [vmem:[%s4751_s12 + $0x38] sm:$0xff] }
 0x6c0   : > { %1489 = vrot.lane.b32.xlu0 %v4228_v23, %s4761_s23  ;;  %s4780_s23 = smov 80  }
 0x733   : > { %v1334_v26 = vpop.xlane.xlu0 %1333 }
 0x734   : > { %4013 = vrcp.f32 %v1334_v26  ;;  %v1865_v26 = vld [vmem:[%s4751_s12 + $0x30] sm:$0xff] }
 0x737   : > { %v1490_v29 = vpop.permute.xlu0 %1489 }
 0x741   : > { %v4014_v27 = vpop.eup %4013 }
 0x742   : > { %v1336_v28 = vmul.f32 %v4014_v27, %v4012_v24  ;;  %v1867_v24 = vld [vmem:[%s4751_s12 + $0x40] sm:$0xff]  ;;  %v1864_v27 = vld [vmem:[%s4751_s12 + $0x28] sm:$0xff] }
 0x744   : > { %3773 = vmatmul.mubr.msk.f32.vlgmr.msra.gmra.mxu1 %vm763_vm2, %v1336_v28  ;;  %v1863_v28 = vld [vmem:[%s4751_s12 + $0x20] sm:$0xff] }
 0x745   : > { %3781 = vmatpush3.xpose.msk.msra.mxu1 %vm763_vm2, %v1490_v29  ;;  %3782 = vmatprep.mubr.msk.f32.mxu1 %vm4058_vm1, %v4057_v8  ;;  %v1862_v29 = vld [vmem:[%s4751_s12 + $0x18] sm:$0xff] }
 0x746   : > { %3790 = vmatprep.subr.mxu1 %v4057_v8 }
 0x748   : > { %3783 = vmatmul.mubr.msk.f32.vlgmr.msra.gmra.mxu1 %vm763_vm2, %v1488_v30  ;;  %v1861_v30 = vld [vmem:[%s4751_s12 + $0x10] sm:$0xff] }
 0x749   : > { %3792 = vmatprep.mubr.msk.f32.mxu1 %vm4058_vm1, %v4057_v8  ;;  %3791 = vmatpush3.msra.mxu1 %v759_v46 }
 0x74a   : > { %3806 = vmatprep.subr.mxu1 %v4057_v8 }
 0x804   : > { %v1409_v32 = vpop.f32.mrf.mxu1 }
 0x805   : > { %3778 = vmatmul.mubr.msk.f32.vlgmr.msra.gmra.mxu0 %vm763_vm2, %v1409_v32  ;;  %v1859_v32 = vld [vmem:[%s4751_s12] sm:$0xff] }
 0x806   : > { %v3774_v33 = vpop.f32.mrf.mxu1  ;;  %3787 = vmatprep.mubr.msk.f32.mxu0 %vm4058_vm1, %v4057_v8 }
 0x807   : > { %v3541_v33 = vld [vmem:[%s4750_s11] ss:$0 sm:$0xff] }
 0x808   : > { %v1561_v35 = vpop.f32.mrf.mxu1 }
 0x809   : > { %v1565_v36 = vmul.f32 0.35355338, %v1561_v35 }
 0x80a   : > { %v3784_v37 = vpop.f32.mrf.mxu1 }
 0x80b   : > { %v1566_v38 = vadd.f32 %v1565_v36, %v4251_v34 }
 0x80d   : > { %v1567_v39 = vsel %vm763_vm2, %v1566_v38, -inf }
 0x80e   : > { %1568 = vmax.xlane.f32.xlu1 %v1567_v39 }
 0x897   : > { %v1569_v40 = vpop.xlane.xlu1 %1568 }
 0x898   : > { %v1570_v41 = vsub.f32 %v1566_v38, %v1569_v40 }
 0x89a   : > { %v1571_v42 = vmul.f32 1.442695, %v1570_v41 }
 0x89c   : > { %4015 = vpow2.f32 %v1571_v42 }
 0x8a9   : > { %v4016_v43 = vpop.eup %4015 }
 0x8aa   : > { %v1573_v44 = vsel %vm763_vm2, %v4016_v43, 0.0 }
 0x8ab   : > { %1574 = vadd.xlane.f32.xlu0 %v1573_v44 }
 0x8c1   : > { %1578 = vrot.lane.b32.xlu0 %v4228_v23, %s4762_s24  ;;  %s4783_s24 = smov 72  }
 0x8c5   : > { %v1482_v45 = vpop.f32.mrf.mxu0 }
 0x8c6   : > { %v1486_v47 = vadd.f32 %v1482_v45, %v1243_v11 }
 0x8c7   : > { %v3779_v48 = vpop.f32.mrf.mxu0 }
 0x934   : > { %v1575_v49 = vpop.xlane.xlu0 %1574 }
 0x935   : > { %4017 = vrcp.f32 %v1575_v49 }
 0x938   : > { %v1579_v50 = vpop.permute.xlu0 %1578 }
 0x939   : > { %3786 = vmatpush3.msra.mxu0 %v1579_v50 }
 0x93a   : > { %3795 = vmatprep.subr.mxu0 %v4057_v8 }
 0x942   : > { %v4018_v51 = vpop.eup %4017 }
 0x943   : > { %v1577_v52 = vmul.f32 %v4018_v51, %v4016_v43 }
 0x945   : > { %3788 = vmatmul.mubr.msk.f32.vlgmr.msra.gmra.mxu0 %vm763_vm2, %v1577_v52 }
 0x946   : > { %3803 = vmatprep.mubr.msk.f32.mxu0 %vm4058_vm1, %v4057_v8  ;;  %3796 = vmatpush3.msra.mxu0 %v1769_v2 }
 0x947   : > { %3797 = vmatprep.subr.mxu0 %v4057_v8 }
 0x948   : > { %3798 = vmatpush3.msra.mxu0 %v1768_v3  ;;  %v3545_v3 = vld [vmem:[%s4754_s15] ss:$0 sm:$0xff] }
 0x949   : > { %3799 = vmatprep.subr.mxu0 %v4057_v8 }
 0xa05   : > { %v1650_v23 = vpop.f32.mrf.mxu0 }
 0xa06   : > { %3793 = vmatmul.mubr.msk.f32.vlgmr.msra.gmra.mxu1 %vm763_vm2, %v1650_v23 }
 0xa07   : > { %v3789_v53 = vpop.f32.mrf.mxu0  ;;  %3838 = vmatprep.mubr.msk.f32.mxu1 %vm4058_vm1, %v4057_v8  ;;  %3807 = vmatpush3.msra.mxu1 %v1874_v15 }
 0xa08   : > { %3808 = vmatprep.subr.mxu1 %v4057_v8 }
 0xa09   : > { %3809 = vmatpush3.msra.mxu1 %v1873_v16 }
 0xa0a   : > { %3810 = vmatprep.subr.mxu1 %v4057_v8 }
 0xa0b   : > { %3811 = vmatpush3.msra.mxu1 %v1872_v17 }
 0xa0c   : > { %3812 = vmatprep.subr.mxu1 %v4057_v8 }
 0xa0d   : > { %3813 = vmatpush3.msra.mxu1 %v1871_v18 }
 0xa0e   : > { %3814 = vmatprep.subr.mxu1 %v4057_v8 }
 0xa0f   : > { %3815 = vmatpush3.msra.mxu1 %v1870_v19 }
 0xa10   : > { %3816 = vmatprep.subr.mxu1 %v4057_v8 }
 0xa11   : > { %3817 = vmatpush3.msra.mxu1 %v1869_v21 }
 0xa12   : > { %3818 = vmatprep.subr.mxu1 %v4057_v8 }
 0xa13   : > { %3819 = vmatpush3.msra.mxu1 %v1868_v22 }
 0xa14   : > { %3820 = vmatprep.subr.mxu1 %v4057_v8 }
 0xa15   : > { %3821 = vmatpush3.msra.mxu1 %v1867_v24 }
 0xa16   : > { %3822 = vmatprep.subr.mxu1 %v4057_v8 }
 0xa17   : > { %3823 = vmatpush3.msra.mxu1 %v1866_v25 }
 0xa18   : > { %3824 = vmatprep.subr.mxu1 %v4057_v8 }
 0xa19   : > { %3825 = vmatpush3.msra.mxu1 %v1865_v26 }
 0xa1a   : > { %3826 = vmatprep.subr.mxu1 %v4057_v8 }
 0xa1b   : > { %3827 = vmatpush3.msra.mxu1 %v1864_v27 }
 0xa1c   : > { %3828 = vmatprep.subr.mxu1 %v4057_v8 }
 0xa1d   : > { %3829 = vmatpush3.msra.mxu1 %v1863_v28 }
 0xa1e   : > { %3830 = vmatprep.subr.mxu1 %v4057_v8 }
 0xa1f   : > { %3831 = vmatpush3.msra.mxu1 %v1862_v29  ;;  %v3553_v29 = vld [vmem:[%s4745_s6 + $0x20] sm:$0xff] }
 0xa20   : > { %3832 = vmatprep.subr.mxu1 %v4057_v8 }
 0xa21   : > { %3833 = vmatpush3.msra.mxu1 %v1861_v30 }
 0xa22   : > { %3834 = vmatprep.subr.mxu1 %v4057_v8 }
 0xa23   : > { %3835 = vmatpush3.msra.mxu1 %v1860_v31 }
 0xa24   : > { %3836 = vmatprep.subr.mxu1 %v4057_v8 }
 0xa25   : > { %3837 = vmatpush3.msra.mxu1 %v1859_v32 }
 0xa26   : > { %3877 = vmatprep.subr.mxu1 %v4057_v8 }
 0xac6   : > { %v1723_v54 = vpop.f32.mrf.mxu1 }
 0xac7   : > { %v1727_v56 = vadd.f32 %v1723_v54, %v1486_v47  ;;  %v3543_v47 = vld [vmem:[%s4752_s13] ss:$0 sm:$0xff] }
 0xac8   : > { %v3794_v57 = vpop.f32.mrf.mxu1 }
 0xac9   : > { %v1735_v58 = vadd.f32 %v3538_v55, %v1727_v56  ;;  %v3549_v57 = vld [vmem:[%s4774_s28 + $0x38] sm:$0xff] }
 0xacb   : > { %v1736_v59 = vadd.f32 %v1735_v58, %v4219_v20  ;;  %v1767_v20 = vld [vmem:[%s4749_s10 + $0x8] sm:$0xff]  ;;  %v3548_v58 = vld [vmem:[%s4774_s28 + $0x30] sm:$0xff] }
 0xacc   : > { %3800 = vmatpush3.msra.mxu0 %v1767_v20 }
 0xacd   : > { %v1739_v60 = vsel %vm640_vm0, %v1736_v59, 0.0  ;;  %3801 = vmatprep.subr.mxu0 %v4057_v8 }
 0xace   : > { %1740 = vadd.xlane.f32.xlu1 %v1739_v60  ;;  %3802 = vmatpush3.msra.mxu0 %v1766_v4  ;;  %v3546_v60 = vld [vmem:[%s4774_s28 + $0x20] sm:$0xff] }
 0xacf   : > { %3841 = vmatprep.subr.mxu0 %v4057_v8 }
 0xb57   : > { %v1741_v61 = vpop.xlane.xlu1 %1740 }
 0xb58   : > { %v1742_v62 = vmul.f32 0.03125, %v1741_v61 }
 0xb5a   : > { %v1743_v63 = vsub.f32 %v1736_v59, %v1742_v62  ;;  %v3547_v59 = vld [vmem:[%s4774_s28 + $0x28] sm:$0xff] }
 0xb5c   : > { %v1744_v0 = vmul.f32 %v1743_v63, %v1743_v63 }
 0xb5e   : > { %v1745_v1 = vsel %vm640_vm0, %v1744_v0, 0.0 }
 0xb5f   : > { %1746 = vadd.xlane.f32.xlu1 %v1745_v1  ;;  %v3544_v1 = vld [vmem:[%s4753_s14] ss:$0 sm:$0xff] }
 0xbe8   : > { %v1747_v5 = vpop.xlane.xlu1 %1746 }
 0xbe9   : > { %v1748_v6 = vmul.f32 0.03125, %v1747_v5  ;;  %v3551_v5 = vld [vmem:[%s4744_s5 + $0x1] ss:$0 sm:$0xff] }
 0xbeb   : > { %v1749_v7 = vadd.f32 1e-12, %v1748_v6 }
 0xbed   : > { %4019 = vrsqrt.f32 %v1749_v7 }
 0xbfa   : > { %v4020_v9 = vpop.eup %4019 }
 0xbfb   : > { %v1751_v11 = vmul.f32 %v4020_v9, %v1743_v63 }
 0xbfd   : > { %v1758_v13 = vmul.f32 %v3539_v10, %v1751_v11 }
 0xbff   : > { %v4363_v14 = vadd.f32 %v3540_v12, %v1758_v13 }
 0xc01   : > { %3804 = vmatmul.mubr.msk.f32.vlgmr.msra.gmra.mxu0 %vm640_vm0, %v4363_v14 }
 0xc02   : > { %3849 = vmatprep.mubr.msk.f32.mxu0 %vm4058_vm1, %v4057_v8  ;;  %3842 = vmatpush3.msra.mxu0 %v3549_v57 }
 0xc03   : > { %3843 = vmatprep.subr.mxu0 %v4057_v8 }
 0xc04   : > { %3844 = vmatpush3.msra.mxu0 %v3548_v58 }
 0xc05   : > { %3845 = vmatprep.subr.mxu0 %v4057_v8 }
 0xc06   : > { %3846 = vmatpush3.msra.mxu0 %v3547_v59 }
 0xc07   : > { %3847 = vmatprep.subr.mxu0 %v4057_v8 }
 0xc08   : > { %3848 = vmatpush3.msra.mxu0 %v3546_v60 }
 0xc09   : > { %3852 = vmatprep.subr.mxu0 %v4057_v8 }
 0xcc1   : > { %v1846_v35 = vpop.f32.mrf.mxu0 }
 0xcc2   : > { %v1847_v36 = vadd.f32 %v3541_v33, %v1846_v35 }
 0xcc3   : > { %v3805_v37 = vpop.f32.mrf.mxu0 }
 0xcc4   : > { %v1851_v38 = vmul.f32 0.044715, %v1847_v36  ;;  %v1850_v44 = vmul.f32 0.5, %v1847_v36 }
 0xcc6   : > { %v1852_v39 = vmul.f32 %v1851_v38, %v1847_v36 }
 0xcc8   : > { %v1853_v40 = vmul.f32 %v1852_v39, %v1847_v36 }
 0xcca   : > { %v1854_v41 = vadd.f32 %v1853_v40, %v1847_v36 }
 0xccc   : > { %v1855_v42 = vmul.f32 0.7978846, %v1854_v41 }
 0xcce   : > { %4021 = vtanh.f32 %v1855_v42 }
 0xcdb   : > { %v4022_v43 = vpop.eup %4021 }
 0xcdc   : > { %v1857_v45 = vadd.f32 1.0, %v4022_v43 }
 0xcde   : > { %v1858_v46 = vmul.f32 %v1857_v45, %v1850_v44 }
 0xce0   : > { %3839 = vmatmul.mubr.f32.vlgmr.msra.gmra.mxu1 %v1858_v46 }
 0xce1   : > { %3879 = vmatprep.mubr.msk.f32.mxu1 %vm4058_vm1, %v4057_v8  ;;  %3878 = vmatpush3.msra.mxu1 %v3553_v29 }
 0xce2   : > { %3887 = vmatprep.subr.mxu1 %v4057_v8 }
 0xda0   : > { %v1948_v48 = vpop.f32.mrf.mxu1 }
 0xda1   : > { %v1949_v49 = vadd.f32 %v3543_v47, %v1948_v48 }
 0xda2   : > { %v3840_v50 = vpop.f32.mrf.mxu1 }
 0xda3   : > { %v1952_v51 = vadd.f32 %v1949_v49, %v4363_v14  ;;  %v3554_v49 = vld [vmem:[%s4745_s6 + $0x28] sm:$0xff] }
 0xda5   : > { %v1955_v52 = vsel %vm640_vm0, %v1952_v51, 0.0 }
 0xda6   : > { %1956 = vadd.xlane.f32.xlu1 %v1955_v52 }
 0xe2f   : > { %v1957_v23 = vpop.xlane.xlu1 %1956 }
 0xe30   : > { %v1958_v53 = vmul.f32 0.03125, %v1957_v23 }
 0xe32   : > { %v1959_v54 = vsub.f32 %v1952_v51, %v1958_v53 }
 0xe34   : > { %v1960_v55 = vmul.f32 %v1959_v54, %v1959_v54 }
 0xe36   : > { %v1961_v56 = vsel %vm640_vm0, %v1960_v55, 0.0 }
 0xe37   : > { %1962 = vadd.xlane.f32.xlu1 %v1961_v56 }
 0xec0   : > { %v1963_v61 = vpop.xlane.xlu1 %1962 }
 0xec1   : > { %v1964_v62 = vmul.f32 0.03125, %v1963_v61 }
 0xec3   : > { %v1965_v63 = vadd.f32 1e-12, %v1964_v62 }
 0xec5   : > { %4023 = vrsqrt.f32 %v1965_v63 }
 0xed2   : > { %v4024_v0 = vpop.eup %4023 }
 0xed3   : > { %v1967_v2 = vmul.f32 %v4024_v0, %v1959_v54 }
 0xed5   : > { %v1974_v20 = vmul.f32 %v3544_v1, %v1967_v2 }
 0xed7   : > { %v4466_v4 = vadd.f32 %v3545_v3, %v1974_v20 }
 0xed9   : > { %3850 = vmatmul.mubr.msk.f32.vlgmr.msra.gmra.mxu0 %vm640_vm0, %v4466_v4 }
 0xeda   : > { %3854 = vmatprep.mubr.msk.f32.mxu0 %vm4058_vm1, %v4057_v8 }
 0xf99   : > { %v2064_v6 = vpop.f32.mrf.mxu0 }
 0xf9a   : > { %v4475_v7 = vadd.f32 %v3551_v5, %v2064_v6 }
 0xf9b   : > { %v3851_v9 = vpop.f32.mrf.mxu0 }
 0xf9c   : > { %2074 = vrot.lane.b32.xlu1 %v4475_v7, %s4060_s0  ;;  %v3555_v9 = vld [vmem:[%s4745_s6 + $0x30] sm:$0xff] }
0x100e   : > { %v2075_v10 = vpop.permute.xlu1 %2074 }
0x100f   : > { %3853 = vmatpush3.xpose.msk.msra.mxu0 %vm763_vm2, %v2075_v10 }
0x1010   : > { %3857 = vmatprep.subr.mxu0 %v4057_v8 }
0x1012   : > { %3855 = vmatmul.mubr.msk.f32.vlgmr.msra.gmra.mxu0 %vm763_vm2, %v4475_v7 }
0x1013   : > { %3859 = vmatprep.mubr.msk.f32.mxu0 %vm4058_vm1, %v4057_v8 }
0x10d2   : > { %v2146_v11 = vpop.f32.mrf.mxu0 }
0x10d3   : > { %v2150_v12 = vmul.f32 0.35355338, %v2146_v11 }
0x10d4   : > { %v3856_v13 = vpop.f32.mrf.mxu0 }
0x10d5   : > { %v2151_v14 = vadd.f32 %v2150_v12, %v4251_v34 }
0x10d7   : > { %v2152_v15 = vsel %vm763_vm2, %v2151_v14, -inf }
0x10d8   : > { %2153 = vmax.xlane.f32.xlu0 %v2152_v15 }
0x10ee   : > { %2163 = vrot.lane.b32.xlu0 %v4475_v7, %s4063_s26  ;;  %s4779_s26 = smov 112  }
0x10f2   : > { %2239 = vrot.lane.b32.xlu0 %v4475_v7, %s4059_s30  ;;  %s4784_s30 = smov 40  }
0x1161   : > { %v2154_v16 = vpop.xlane.xlu0 %2153 }
0x1162   : > { %v2155_v17 = vsub.f32 %v2151_v14, %v2154_v16 }
0x1164   : > { %v2156_v18 = vmul.f32 1.442695, %v2155_v17 }
0x1165   : > { %v2164_v19 = vpop.permute.xlu0 %2163 }
0x1166   : > { %4025 = vpow2.f32 %v2156_v18  ;;  %3858 = vmatpush3.msra.mxu0 %v2164_v19 }
0x1167   : > { %3862 = vmatprep.subr.mxu0 %v4057_v8 }
0x1169   : > { %v2240_v28 = vpop.permute.xlu0 %2239 }
0x1173   : > { %v4026_v21 = vpop.eup %4025 }
0x1174   : > { %v2158_v22 = vsel %vm763_vm2, %v4026_v21, 0.0 }
0x1175   : > { %2159 = vadd.xlane.f32.xlu1 %v2158_v22 }
0x1186   : > { %2241 = vrot.lane.b32.xlu1 %v4475_v7, %s4061_s21  ;;  %s4778_s21 = smov 56  }
0x11fe   : > { %v2160_v24 = vpop.xlane.xlu1 %2159 }
0x11ff   : > { %4027 = vrcp.f32 %v2160_v24 }
0x1202   : > { %v2242_v27 = vpop.permute.xlu1 %2241 }
0x120c   : > { %v4028_v25 = vpop.eup %4027 }
0x120d   : > { %v2162_v26 = vmul.f32 %v4028_v25, %v4026_v21 }
0x120f   : > { %3860 = vmatmul.mubr.msk.f32.vlgmr.msra.gmra.mxu0 %vm763_vm2, %v2162_v26  ;;  %v3556_v26 = vld [vmem:[%s4745_s6 + $0x38] sm:$0xff] }
0x1210   : > { %3863 = vmatpush3.xpose.msk.msra.mxu0 %vm763_vm2, %v2242_v27  ;;  %3864 = vmatprep.mubr.msk.f32.mxu0 %vm4058_vm1, %v4057_v8 }
0x1211   : > { %3867 = vmatprep.subr.mxu0 %v4057_v8 }
0x1213   : > { %3865 = vmatmul.mubr.msk.f32.vlgmr.msra.gmra.mxu0 %vm763_vm2, %v2240_v28 }
0x1214   : > { %3869 = vmatprep.mubr.msk.f32.mxu0 %vm4058_vm1, %v4057_v8 }
0x12cf   : > { %v2235_v30 = vpop.f32.mrf.mxu0 }
0x12d0   : > { %3880 = vmatmul.mubr.msk.f32.vlgmr.msra.gmra.mxu1 %vm763_vm2, %v2235_v30 }
0x12d1   : > { %v3861_v31 = vpop.f32.mrf.mxu0  ;;  %3889 = vmatprep.mubr.msk.f32.mxu1 %vm4058_vm1, %v4057_v8 }
0x12d3   : > { %v2313_v32 = vpop.f32.mrf.mxu0 }
0x12d4   : > { %v2317_v33 = vmul.f32 0.35355338, %v2313_v32 }
0x12d5   : > { %v3866_v35 = vpop.f32.mrf.mxu0 }
0x12d6   : > { %v2318_v36 = vadd.f32 %v2317_v33, %v4251_v34  ;;  %v3574_v35 = vld [vmem:[%s4746_s7 + $0x1] ss:$0 sm:$0xff] }
0x12d8   : > { %v2319_v37 = vsel %vm763_vm2, %v2318_v36, -inf }
0x12d9   : > { %2320 = vmax.xlane.f32.xlu0 %v2319_v37 }
0x12ef   : > { %2330 = vrot.lane.b32.xlu0 %v4475_v7, %s4778_s21 }
0x12f3   : > { %2552 = vrot.lane.b32.xlu0 %v4475_v7, %s4779_s26 }
0x1362   : > { %v2321_v38 = vpop.xlane.xlu0 %2320 }
0x1363   : > { %v2322_v39 = vsub.f32 %v2318_v36, %v2321_v38 }
0x1365   : > { %v2323_v40 = vmul.f32 1.442695, %v2322_v39 }
0x1366   : > { %v2331_v41 = vpop.permute.xlu0 %2330 }
0x1367   : > { %4029 = vpow2.f32 %v2323_v40  ;;  %3868 = vmatpush3.msra.mxu0 %v2331_v41 }
0x1368   : > { %3872 = vmatprep.subr.mxu0 %v4057_v8 }
0x136a   : > { %v2553_v23 = vpop.permute.xlu0 %2552 }
0x1374   : > { %v4030_v42 = vpop.eup %4029 }
0x1375   : > { %v2325_v43 = vsel %vm763_vm2, %v4030_v42, 0.0 }
0x1376   : > { %2326 = vadd.xlane.f32.xlu1 %v2325_v43 }
0x1387   : > { %2554 = vrot.lane.b32.xlu1 %v4475_v7, %s4780_s23 }
0x1390   : > { %v4520_v44 = vpop.f32.mrf.mxu1 }
0x1392   : > { %v3881_v45 = vpop.f32.mrf.mxu1 }
0x13ff   : > { %v2327_v46 = vpop.xlane.xlu1 %2326 }
0x1400   : > { %4031 = vrcp.f32 %v2327_v46  ;;  %v3582_v46 = vld [vmem:[%s4749_s10 + $0x38] sm:$0xff] }
0x1403   : > { %v2555_v51 = vpop.permute.xlu1 %2554 }
0x140d   : > { %v4032_v47 = vpop.eup %4031 }
0x140e   : > { %v2329_v48 = vmul.f32 %v4032_v47, %v4030_v42  ;;  %v3581_v47 = vld [vmem:[%s4749_s10 + $0x30] sm:$0xff] }
0x1410   : > { %3870 = vmatmul.mubr.msk.f32.vlgmr.msra.gmra.mxu0 %vm763_vm2, %v2329_v48  ;;  %v3579_v48 = vld [vmem:[%s4749_s10 + $0x20] sm:$0xff] }
0x1411   : > { %3873 = vmatpush3.msra.mxu0 %v3554_v49  ;;  %3874 = vmatprep.mubr.msk.f32.mxu0 %vm4058_vm1, %v4057_v8 }
0x1412   : > { %3882 = vmatprep.subr.mxu0 %v4057_v8 }
0x14d0   : > { %v2402_v50 = vpop.f32.mrf.mxu0 }
0x14d1   : > { %3875 = vmatmul.mubr.msk.f32.vlgmr.msra.gmra.mxu0 %vm763_vm2, %v2402_v50 }
0x14d2   : > { %3883 = vmatpush3.xpose.msk.msra.mxu0 %vm763_vm2, %v2555_v51  ;;  %v3871_v52 = vpop.f32.mrf.mxu0  ;;  %3884 = vmatprep.mubr.msk.f32.mxu0 %vm4058_vm1, %v4057_v8 }
0x14d3   : > { %3892 = vmatprep.subr.mxu0 %v4057_v8 }
0x14d5   : > { %3885 = vmatmul.mubr.msk.f32.vlgmr.msra.gmra.mxu0 %vm763_vm2, %v2553_v23  ;;  %v3577_v23 = vld [vmem:[%s4747_s8 + $0x1] ss:$0 sm:$0xff] }
0x14d6   : > { %3894 = vmatprep.mubr.msk.f32.mxu0 %vm4058_vm1, %v4057_v8  ;;  %3893 = vmatpush3.msra.mxu0 %v3555_v9  ;;  %v3587_v9 = vld [vmem:[%s4751_s12 + $0x88] sm:$0xff] }
0x14d7   : > { %3902 = vmatprep.subr.mxu0 %v4057_v8 }
0x1591   : > { %v2475_v53 = vpop.f32.mrf.mxu0 }
0x1593   : > { %v3876_v54 = vpop.f32.mrf.mxu0 }
0x1594   : > { %v3578_v54 = vld [vmem:[%s4748_s9 + $0x1] ss:$0 sm:$0xff] }
0x1595   : > { %v2626_v55 = vpop.f32.mrf.mxu0 }
0x1596   : > { %v2630_v56 = vmul.f32 0.35355338, %v2626_v55 }
0x1597   : > { %v3886_v57 = vpop.f32.mrf.mxu0 }
0x1598   : > { %v2631_v58 = vadd.f32 %v2630_v56, %v4251_v34  ;;  %v3601_v57 = vld [vmem:[%s4751_s12 + $0xf8] sm:$0xff] }
0x159a   : > { %v2632_v59 = vsel %vm763_vm2, %v2631_v58, -inf }
0x159b   : > { %2633 = vmax.xlane.f32.xlu0 %v2632_v59  ;;  %v3599_v59 = vld [vmem:[%s4751_s12 + $0xe8] sm:$0xff] }
0x15b1   : > { %2643 = vrot.lane.b32.xlu0 %v4475_v7, %s4781_s25  ;;  %s636_s25 = scalar_lea.vmem %s4759_s20, %s4786_s22 }
0x15b5   : > { %2793 = vrot.lane.b32.xlu0 %v4475_v7, %s4782_s29 }
0x1624   : > { %v2634_v60 = vpop.xlane.xlu0 %2633 }
0x1625   : > { %v2635_v61 = vsub.f32 %v2631_v58, %v2634_v60  ;;  %v3600_v58 = vld [vmem:[%s4751_s12 + $0xf0] sm:$0xff]  ;;  %v3598_v60 = vld [vmem:[%s4751_s12 + $0xe0] sm:$0xff] }
0x1627   : > { %v2636_v62 = vmul.f32 1.442695, %v2635_v61  ;;  %v3597_v61 = vld [vmem:[%s4751_s12 + $0xd8] sm:$0xff] }
0x1628   : > { %v2644_v63 = vpop.permute.xlu0 %2643 }
0x1629   : > { %4033 = vpow2.f32 %v2636_v62  ;;  %3888 = vmatpush3.msra.mxu1 %v2644_v63  ;;  %v3596_v62 = vld [vmem:[%s4751_s12 + $0xd0] sm:$0xff]  ;;  %v3595_v63 = vld [vmem:[%s4751_s12 + $0xc8] sm:$0xff] }
0x162a   : > { %3897 = vmatprep.subr.mxu1 %v4057_v8 }
0x162c   : > { %v2794_v6 = vpop.permute.xlu0 %2793 }
0x1636   : > { %v4034_v0 = vpop.eup %4033 }
0x1637   : > { %v2638_v1 = vsel %vm763_vm2, %v4034_v0, 0.0 }
0x1638   : > { %2639 = vadd.xlane.f32.xlu1 %v2638_v1  ;;  %v3593_v1 = vld [vmem:[%s4751_s12 + $0xb8] sm:$0xff] }
0x1649   : > { %2795 = vrot.lane.b32.xlu1 %v4475_v7, %s4783_s24 }
0x16c1   : > { %v2640_v2 = vpop.xlane.xlu1 %2639 }
0x16c2   : > { %4035 = vrcp.f32 %v2640_v2  ;;  %v3592_v2 = vld [vmem:[%s4751_s12 + $0xb0] sm:$0xff] }
0x16c5   : > { %v2796_v5 = vpop.permute.xlu1 %2795 }
0x16cf   : > { %v4036_v3 = vpop.eup %4035 }
0x16d0   : > { %v2642_v20 = vmul.f32 %v4036_v3, %v4034_v0  ;;  %v3594_v0 = vld [vmem:[%s4751_s12 + $0xc0] sm:$0xff]  ;;  %v3591_v3 = vld [vmem:[%s4751_s12 + $0xa8] sm:$0xff] }
0x16d2   : > { %3890 = vmatmul.mubr.msk.f32.vlgmr.msra.gmra.mxu1 %vm763_vm2, %v2642_v20  ;;  %v3590_v20 = vld [vmem:[%s4751_s12 + $0xa0] sm:$0xff] }
0x16d3   : > { %3898 = vmatpush3.xpose.msk.msra.mxu1 %vm763_vm2, %v2796_v5  ;;  %3899 = vmatprep.mubr.msk.f32.mxu1 %vm4058_vm1, %v4057_v8  ;;  %v3589_v5 = vld [vmem:[%s4751_s12 + $0x98] sm:$0xff] }
0x16d4   : > { %3907 = vmatprep.subr.mxu1 %v4057_v8 }
0x16d6   : > { %3900 = vmatmul.mubr.msk.f32.vlgmr.msra.gmra.mxu1 %vm763_vm2, %v2794_v6  ;;  %v3588_v6 = vld [vmem:[%s4751_s12 + $0x90] sm:$0xff] }
0x16d7   : > { %3909 = vmatprep.mubr.msk.f32.mxu1 %vm4058_vm1, %v4057_v8  ;;  %3908 = vmatpush3.msra.mxu1 %v3556_v26 }
0x16d8   : > { %3923 = vmatprep.subr.mxu1 %v4057_v8 }
0x1792   : > { %v2715_v10 = vpop.f32.mrf.mxu1 }
0x1793   : > { %3895 = vmatmul.mubr.msk.f32.vlgmr.msra.gmra.mxu0 %vm763_vm2, %v2715_v10  ;;  %v3586_v10 = vld [vmem:[%s4751_s12 + $0x80] sm:$0xff] }
0x1794   : > { %v3891_v11 = vpop.f32.mrf.mxu1  ;;  %3904 = vmatprep.mubr.msk.f32.mxu0 %vm4058_vm1, %v4057_v8 }
0x1795   : > { %v3584_v11 = vld [vmem:[%s4750_s11 + $0x1] ss:$0 sm:$0xff] }
0x1796   : > { %v2867_v12 = vpop.f32.mrf.mxu1 }
0x1797   : > { %v2871_v13 = vmul.f32 0.35355338, %v2867_v12 }
0x1798   : > { %v3901_v14 = vpop.f32.mrf.mxu1 }
0x1799   : > { %v2872_v15 = vadd.f32 %v2871_v13, %v4251_v34  ;;  %v2549_v34 = vadd.f32 %v4520_v44, %v2475_v53 }
0x179b   : > { %v2873_v16 = vsel %vm763_vm2, %v2872_v15, -inf }
0x179c   : > { %2874 = vmax.xlane.f32.xlu0 %v2873_v16 }
0x17b2   : > { %2884 = vrot.lane.b32.xlu0 %v4475_v7, %s4784_s30 }
0x1825   : > { %v2875_v17 = vpop.xlane.xlu0 %2874 }
0x1826   : > { %v2876_v18 = vsub.f32 %v2872_v15, %v2875_v17 }
0x1828   : > { %v2877_v19 = vmul.f32 1.442695, %v2876_v18 }
0x1829   : > { %v2885_v21 = vpop.permute.xlu0 %2884 }
0x182a   : > { %4037 = vpow2.f32 %v2877_v19  ;;  %3903 = vmatpush3.msra.mxu0 %v2885_v21 }
0x182b   : > { %3912 = vmatprep.subr.mxu0 %v4057_v8 }
0x1837   : > { %v4038_v22 = vpop.eup %4037 }
0x1838   : > { %v2879_v24 = vsel %vm763_vm2, %v4038_v22, 0.0 }
0x1839   : > { %2880 = vadd.xlane.f32.xlu1 %v2879_v24 }
0x1853   : > { %v2788_v25 = vpop.f32.mrf.mxu0 }
0x1854   : > { %v2792_v7 = vadd.f32 %v2788_v25, %v2549_v34  ;;  %v3603_v25 = vld [vmem:[%s4752_s13 + $0x1] ss:$0 sm:$0xff] }
0x1855   : > { %v3896_v27 = vpop.f32.mrf.mxu0 }
0x18c2   : > { %v2881_v28 = vpop.xlane.xlu1 %2880 }
0x18c3   : > { %4039 = vrcp.f32 %v2881_v28 }
0x18d0   : > { %v4040_v29 = vpop.eup %4039 }
0x18d1   : > { %v2883_v30 = vmul.f32 %v4040_v29, %v4038_v22 }
0x18d3   : > { %3905 = vmatmul.mubr.msk.f32.vlgmr.msra.gmra.mxu0 %vm763_vm2, %v2883_v30 }
0x18d4   : > { %3920 = vmatprep.mubr.msk.f32.mxu0 %vm4058_vm1, %v4057_v8  ;;  %3913 = vmatpush3.msra.mxu0 %v3582_v46  ;;  %v3607_v46 = vld [vmem:[%s4754_s15 + $0x1] ss:$0 sm:$0xff] }
0x18d5   : > { %3914 = vmatprep.subr.mxu0 %v4057_v8 }
0x18d6   : > { %3915 = vmatpush3.msra.mxu0 %v3581_v47 }
0x18d7   : > { %3916 = vmatprep.subr.mxu0 %v4057_v8 }
0x1993   : > { %v2956_v31 = vpop.f32.mrf.mxu0 }
0x1994   : > { %3910 = vmatmul.mubr.msk.f32.vlgmr.msra.gmra.mxu1 %vm763_vm2, %v2956_v31 }
0x1995   : > { %v3906_v32 = vpop.f32.mrf.mxu0  ;;  %3955 = vmatprep.mubr.msk.f32.mxu1 %vm4058_vm1, %v4057_v8  ;;  %3924 = vmatpush3.msra.mxu1 %v3601_v57 }
0x1996   : > { %3925 = vmatprep.subr.mxu1 %v4057_v8 }
0x1997   : > { %3926 = vmatpush3.msra.mxu1 %v3600_v58 }
0x1998   : > { %3927 = vmatprep.subr.mxu1 %v4057_v8 }
0x1999   : > { %3928 = vmatpush3.msra.mxu1 %v3599_v59 }
0x199a   : > { %3929 = vmatprep.subr.mxu1 %v4057_v8 }
0x199b   : > { %3930 = vmatpush3.msra.mxu1 %v3598_v60 }
0x199c   : > { %3931 = vmatprep.subr.mxu1 %v4057_v8 }
0x199d   : > { %3932 = vmatpush3.msra.mxu1 %v3597_v61 }
0x199e   : > { %3933 = vmatprep.subr.mxu1 %v4057_v8 }
0x199f   : > { %3934 = vmatpush3.msra.mxu1 %v3596_v62 }
0x19a0   : > { %3935 = vmatprep.subr.mxu1 %v4057_v8 }
0x19a1   : > { %3936 = vmatpush3.msra.mxu1 %v3595_v63 }
0x19a2   : > { %3937 = vmatprep.subr.mxu1 %v4057_v8 }
0x19a3   : > { %3938 = vmatpush3.msra.mxu1 %v3594_v0 }
0x19a4   : > { %3939 = vmatprep.subr.mxu1 %v4057_v8 }
0x19a5   : > { %3940 = vmatpush3.msra.mxu1 %v3593_v1 }
0x19a6   : > { %3941 = vmatprep.subr.mxu1 %v4057_v8 }
0x19a7   : > { %3942 = vmatpush3.msra.mxu1 %v3592_v2 }
0x19a8   : > { %3943 = vmatprep.subr.mxu1 %v4057_v8 }
0x19a9   : > { %3944 = vmatpush3.msra.mxu1 %v3591_v3 }
0x19aa   : > { %3945 = vmatprep.subr.mxu1 %v4057_v8 }
0x19ab   : > { %3946 = vmatpush3.msra.mxu1 %v3590_v20 }
0x19ac   : > { %3947 = vmatprep.subr.mxu1 %v4057_v8 }
0x19ad   : > { %3948 = vmatpush3.msra.mxu1 %v3589_v5 }
0x19ae   : > { %3949 = vmatprep.subr.mxu1 %v4057_v8 }
0x19af   : > { %3950 = vmatpush3.msra.mxu1 %v3588_v6 }
0x19b0   : > { %3951 = vmatprep.subr.mxu1 %v4057_v8 }
0x19b1   : > { %3952 = vmatpush3.msra.mxu1 %v3587_v9 }
0x19b2   : > { %3953 = vmatprep.subr.mxu1 %v4057_v8 }
0x19b3   : > { %3954 = vmatpush3.msra.mxu1 %v3586_v10 }
0x1a54   : > { %v3029_v33 = vpop.f32.mrf.mxu1 }
0x1a55   : > { %v3033_v36 = vadd.f32 %v3029_v33, %v2792_v7 }
0x1a56   : > { %v3911_v37 = vpop.f32.mrf.mxu1 }
0x1a57   : > { %v3042_v38 = vadd.f32 %v3574_v35, %v3033_v36  ;;  %v3300_v36 = vld [vmem:[%s4755_s16 + $0x18] sm:$0xff]  ;;  %v3299_v37 = vld [vmem:[%s4755_s16 + $0x10] sm:$0xff] }
0x1a59   : > { %v3043_v39 = vadd.f32 %v3042_v38, %v4466_v4  ;;  %v3580_v4 = vld [vmem:[%s4749_s10 + $0x28] sm:$0xff] }
0x1a5a   : > { %3917 = vmatpush3.msra.mxu0 %v3580_v4  ;;  %v3298_v38 = vld [vmem:[%s4755_s16 + $0x8] sm:$0xff] }
0x1a5b   : > { %v3048_v40 = vsel %vm640_vm0, %v3043_v39, 0.0  ;;  %3918 = vmatprep.subr.mxu0 %v4057_v8 }
0x1a5c   : > { %3049 = vadd.xlane.f32.xlu1 %v3048_v40  ;;  %3919 = vmatpush3.msra.mxu0 %v3579_v48  ;;  %v3379_v48 = vld [vmem:[%s4757_s18 + $0x18] sm:$0xff] }
0x1a5d   : > { %3958 = vmatprep.subr.mxu0 %v4057_v8 }
0x1ae5   : > { %v3050_v41 = vpop.xlane.xlu1 %3049 }
0x1ae6   : > { %v3051_v42 = vmul.f32 0.03125, %v3050_v41 }
0x1ae8   : > { %v3052_v43 = vsub.f32 %v3043_v39, %v3051_v42  ;;  %v3297_v39 = vld [vmem:[%s4755_s16] sm:$0xff] }
0x1aea   : > { %v3053_v44 = vmul.f32 %v3052_v43, %v3052_v43 }
0x1aec   : > { %v3054_v45 = vsel %vm640_vm0, %v3053_v44, 0.0  ;;  %v3606_v44 = vld [vmem:[%s4753_s14 + $0x1] ss:$0 sm:$0xff] }
0x1aed   : > { %3055 = vadd.xlane.f32.xlu1 %v3054_v45 }
0x1b76   : > { %v3056_v49 = vpop.xlane.xlu1 %3055 }
0x1b77   : > { %v3057_v50 = vmul.f32 0.03125, %v3056_v49  ;;  %v3378_v49 = vld [vmem:[%s4757_s18 + $0x10] sm:$0xff] }
0x1b79   : > { %v3058_v51 = vadd.f32 1e-12, %v3057_v50  ;;  %v3377_v50 = vld [vmem:[%s4757_s18 + $0x8] sm:$0xff] }
0x1b7b   : > { %4041 = vrsqrt.f32 %v3058_v51  ;;  %v3376_v51 = vld [vmem:[%s4757_s18] sm:$0xff] }
0x1b88   : > { %v4042_v52 = vpop.eup %4041 }
0x1b89   : > { %v3060_v53 = vmul.f32 %v4042_v52, %v3052_v43  ;;  %v3301_v52 = vld [vmem:[%s4756_s17] sm:$0x1] }
0x1b8b   : > { %v3067_v55 = vmul.f32 %v3577_v23, %v3060_v53 }
0x1b8d   : > { %v4607_v56 = vadd.f32 %v3578_v54, %v3067_v55 }
0x1b8f   : > { %3921 = vmatmul.mubr.msk.f32.vlgmr.msra.gmra.mxu0 %vm640_vm0, %v4607_v56 }
0x1b90   : > { %3966 = vmatprep.mubr.msk.f32.mxu0 %vm4058_vm1, %v4057_v8  ;;  %3959 = vmatpush3.msra.mxu0 %v3300_v36 }
0x1b91   : > { %3960 = vmatprep.subr.mxu0 %v4057_v8 }
0x1b92   : > { %3961 = vmatpush3.msra.mxu0 %v3299_v37 }
0x1b93   : > { %3962 = vmatprep.subr.mxu0 %v4057_v8 }
0x1b94   : > { %3963 = vmatpush3.msra.mxu0 %v3298_v38 }
0x1b95   : > { %3964 = vmatprep.subr.mxu0 %v4057_v8 }
0x1b96   : > { %3965 = vmatpush3.msra.mxu0 %v3297_v39 }
0x1b97   : > { %3969 = vmatprep.subr.mxu0 %v4057_v8 }
0x1c4f   : > { %v3157_v12 = vpop.f32.mrf.mxu0 }
0x1c50   : > { %v3158_v13 = vadd.f32 %v3584_v11, %v3157_v12 }
0x1c51   : > { %v3922_v14 = vpop.f32.mrf.mxu0 }
0x1c52   : > { %v3162_v15 = vmul.f32 0.044715, %v3158_v13  ;;  %v3161_v22 = vmul.f32 0.5, %v3158_v13 }
0x1c54   : > { %v3163_v16 = vmul.f32 %v3162_v15, %v3158_v13 }
0x1c56   : > { %v3164_v17 = vmul.f32 %v3163_v16, %v3158_v13 }
0x1c58   : > { %v3165_v18 = vadd.f32 %v3164_v17, %v3158_v13 }
0x1c5a   : > { %v3166_v19 = vmul.f32 0.7978846, %v3165_v18 }
0x1c5c   : > { %4043 = vtanh.f32 %v3166_v19 }
0x1c69   : > { %v4044_v21 = vpop.eup %4043 }
0x1c6a   : > { %v3168_v24 = vadd.f32 1.0, %v4044_v21 }
0x1c6c   : > { %v3169_v34 = vmul.f32 %v3168_v24, %v3161_v22 }
0x1c6e   : > { %3956 = vmatmul.mubr.f32.vlgmr.msra.gmra.mxu1 %v3169_v34 }
0x1d2e   : > { %v3261_v26 = vpop.f32.mrf.mxu1 }
0x1d2f   : > { %v3262_v7 = vadd.f32 %v3603_v25, %v3261_v26 }
0x1d30   : > { %v3957_v27 = vpop.f32.mrf.mxu1 }
0x1d31   : > { %v3265_v28 = vadd.f32 %v3262_v7, %v4607_v56  ;;  %v3380_v56 = vld [vmem:[%s4758_s19] sm:$0x1] }
0x1d33   : > { %v3270_v29 = vsel %vm640_vm0, %v3265_v28, 0.0 }
0x1d34   : > { %3271 = vadd.xlane.f32.xlu1 %v3270_v29 }
0x1dbd   : > { %v3272_v30 = vpop.xlane.xlu1 %3271 }
0x1dbe   : > { %v3273_v31 = vmul.f32 0.03125, %v3272_v30 }
0x1dc0   : > { %v3274_v32 = vsub.f32 %v3265_v28, %v3273_v31 }
0x1dc2   : > { %v3275_v33 = vmul.f32 %v3274_v32, %v3274_v32 }
0x1dc4   : > { %v3276_v35 = vsel %vm640_vm0, %v3275_v33, 0.0 }
0x1dc5   : > { %3277 = vadd.xlane.f32.xlu1 %v3276_v35 }
0x1e4e   : > { %v3278_v40 = vpop.xlane.xlu1 %3277 }
0x1e4f   : > { %v3279_v41 = vmul.f32 0.03125, %v3278_v40 }
0x1e51   : > { %v3280_v42 = vadd.f32 1e-12, %v3279_v41 }
0x1e53   : > { %4045 = vrsqrt.f32 %v3280_v42 }
0x1e60   : > { %v4046_v43 = vpop.eup %4045 }
0x1e61   : > { %v3282_v45 = vmul.f32 %v4046_v43, %v3274_v32 }
0x1e63   : > { %v3289_v47 = vmul.f32 %v3606_v44, %v3282_v45 }
0x1e65   : > { %v3296_v4 = vadd.f32 %v3607_v46, %v3289_v47 }
0x1e67   : > { %3967 = vmatmul.mubr.msk.f32.vlgmr.msra.gmra.mxu0 %vm640_vm0, %v3296_v4 }
0x1e68   : > { %3977 = vmatprep.mubr.msk.f32.mxu0 %vm4058_vm1, %v4057_v8  ;;  %3970 = vmatpush3.msra.mxu0 %v3379_v48 }
0x1e69   : > { %3971 = vmatprep.subr.mxu0 %v4057_v8 }
0x1e6a   : > { %3972 = vmatpush3.msra.mxu0 %v3378_v49 }
0x1e6b   : > { %3973 = vmatprep.subr.mxu0 %v4057_v8 }
0x1e6c   : > { %3974 = vmatpush3.msra.mxu0 %v3377_v50 }
0x1e6d   : > { %3975 = vmatprep.subr.mxu0 %v4057_v8 }
0x1e6e   : > { %3976 = vmatpush3.msra.mxu0 %v3376_v51 }
0x1f27   : > { %v3371_v23 = vpop.f32.mrf.mxu0 }
0x1f28   : > { %v3372_v53 = vadd.f32 %v3371_v23, %v3301_v52 }
0x1f29   : > { %v3968_v54 = vpop.f32.mrf.mxu0 }
0x1f2a   : > { %4047 = vtanh.f32 %v3372_v53 }
0x1f37   : > { %v4048_v55 = vpop.eup %4047 }
0x1f38   : > { %3978 = vmatmul.mubr.msk.f32.vlgmr.msra.gmra.mxu0 %vm640_vm0, %v4048_v55 }
0x1ff8   : > { %v3450_v8 = vpop.f32.mrf.mxu0 }
0x1ff9   : > { %v3451_v57 = vadd.f32 %v3450_v8, %v3380_v56 }
0x1ffa   : > { %v3979_v58 = vpop.f32.mrf.mxu0 }
0x1ffb   : > { %3455 = vst.msk [vmem:[%s636_s25] sm:$0x1] %vm3454_vm3, %v3451_v57 }
0x1ffc PF: > { %s30_s1 = sadd.s32 1, %s4055_s1  }
0x1ffd   : > { %p27_p4 = scmp.ge.s32.totalorder %s30_s1, 4  }
0x1fff   :  { %29 = sbr.rel (!%p27_p4) target bundleno = 6 (0x6), region = 145 }

</bundles_post_ra>
